<compile_context>
chip_gen: v5e
topology: v5e:2x2
jax: 0.10.0
libtpu: 0.0.40
codegen_flags: <defaults>
</compile_context>

<pallas_src>
import jax
import jax.numpy as jnp
from jax.experimental import pallas as pl
from jax.experimental.pallas import tpu as pltpu


def nnmf_mlp_kernel(x_ref, w1_ref, b1_ref, w2_ref, b2_ref, w3_ref, b3_ref,
                    w4_ref, b4_ref, w5_ref, b5_ref, out_ref):
    bf16 = jnp.bfloat16

    def sig(z):
        # sigmoid(z) == 0.5*tanh(0.5*z) + 0.5 : one EUP push, no divide.
        return 0.5 * jnp.tanh(0.5 * z) + 0.5

    x0 = x_ref[...]                                          # (tile_b, Dp) bf16

    # layer1: single K=Dp matmul on the pre-concatenated slab; f32 accum/bias.
    z1 = jnp.dot(x0, w1_ref[...],
                 preferred_element_type=jnp.float32) + b1_ref[...]
    x1 = sig(z1).astype(bf16)                                # store bf16 only

    z2 = jnp.dot(x1, w2_ref[...],
                 preferred_element_type=jnp.float32) + b2_ref[...]
    x2 = sig(z2).astype(bf16)

    z3 = jnp.dot(x2, w3_ref[...],
                 preferred_element_type=jnp.float32) + b3_ref[...]
    x3 = sig(z3).astype(bf16)

    z4 = jnp.dot(x3, w4_ref[...],
                 preferred_element_type=jnp.float32) + b4_ref[...]
    x4 = sig(z4)                                             # f32: feeds VPU, not MXU

    # Final N=1 projection as VPU multiply + sublane reduce (no MXU pass, no
    # masked width-1 store).  w5 is a zero-padded (1, Hp) f32 row; padded
    # lanes of x4 (== 0.5) hit zeroed w5 entries so they contribute nothing.
    y = x4 * w5_ref[...]                                     # (tile_b, Hp) f32
    out_ref[...] = (jnp.sum(y.T, axis=0, keepdims=True)      # (1, tile_b)
                    + b5_ref[...])


def init_params(key, num_user, num_item, num_factor_1=100, num_factor_2=100,
                hidden_dimension=50):
    """Deterministic synthetic init (weights stored as (in, out)), all f32."""
    D = 2 * num_factor_1 + num_factor_2
    H = hidden_dimension
    ks = jax.random.split(key, 14)
    n = lambda k, shape: (0.01 * jax.random.normal(k, shape)).astype(jnp.float32)
    return dict(
        p=n(ks[0], (num_user, num_factor_1)),
        q=n(ks[1], (num_item, num_factor_1)),
        u=n(ks[2], (num_user, num_factor_2)),
        v=n(ks[3], (num_item, num_factor_2)),
        w1=n(ks[4], (D, D)), b1=n(ks[5], (1, D)),
        w2=n(ks[6], (D, H)), b2=n(ks[7], (1, H)),
        w3=n(ks[8], (H, H)), b3=n(ks[9], (1, H)),
        w4=n(ks[10], (H, H)), b4=n(ks[11], (1, H)),
        w5=n(ks[12], (H, 1)), b5=n(ks[13], (1, 1)),
    )


def _pad2(a, rows, cols):
    r, c = a.shape
    return jnp.pad(a, ((0, rows - r), (0, cols - c)))


def nnmf_forward(params, user, item, *, tile_b=1024):
    F1 = params["p"].shape[1]
    F2 = params["u"].shape[1]
    D = 2 * F1 + F2
    H = params["w3"].shape[0]
    Dp = pl.cdiv(D, 128) * 128          # 300 -> 384
    Hp = pl.cdiv(H, 128) * 128          # 50  -> 128

    bf16 = jnp.bfloat16
    B = user.shape[0]

    # Clamp the tile for small batches (don't burn MXU/EUP on garbage rows);
    # keep it a multiple of 128 so the lane-dense (1, tile_b) output block and
    # the (tile_b, Dp) input block satisfy the (8,128) constraints.
    tile_b = min(tile_b, pl.cdiv(B, 128) * 128)
    Bp = pl.cdiv(B, tile_b) * tile_b

    # --- glue: fused gather + u*v + concat -> one (Bp, Dp) bf16 slab --------
    pu = jnp.take(params["p"].astype(bf16), user, axis=0)
    qi = jnp.take(params["q"].astype(bf16), item, axis=0)
    uv = (jnp.take(params["u"].astype(bf16), user, axis=0)
          * jnp.take(params["v"].astype(bf16), item, axis=0))
    x = jnp.concatenate([pu, qi, uv], axis=1)                # (B, D) bf16
    x = jnp.pad(x, ((0, Bp - B), (0, Dp - D)))               # zero-padded (Bp, Dp)

    # --- one-time weight padding (output cols AND next-layer input rows -> 0)
    w1 = _pad2(params["w1"], Dp, Dp).astype(bf16)
    b1 = _pad2(params["b1"], 1, Dp)                          # f32
    w2 = _pad2(params["w2"], Dp, Hp).astype(bf16)
    b2 = _pad2(params["b2"], 1, Hp)
    w3 = _pad2(params["w3"], Hp, Hp).astype(bf16)
    b3 = _pad2(params["b3"], 1, Hp)
    w4 = _pad2(params["w4"], Hp, Hp).astype(bf16)
    b4 = _pad2(params["b4"], 1, Hp)
    w5 = _pad2(params["w5"].T, 1, Hp)                        # (1, Hp) f32 row
    b5 = params["b5"]                                        # (1, 1)  f32

    full = lambda shape: pl.BlockSpec(shape, lambda i: (0, 0))

    # Advisory cost estimate so XLA overlaps the gather/pad glue with the call.
    flops = 2 * Bp * (Dp * Dp + Dp * Hp + 2 * Hp * Hp + Hp)
    transcendentals = Bp * (Dp + 3 * Hp)
    bytes_accessed = (Bp * Dp * 2 + Bp * 4
                      + 2 * (Dp * Dp + Dp * Hp + 2 * Hp * Hp)
                      + 4 * (Dp + 3 * Hp + Hp + 1))

    out = pl.pallas_call(
        nnmf_mlp_kernel,
        # Lane-dense output: one (1, tile_b) row per grid step.
        out_shape=jax.ShapeDtypeStruct((1, Bp), jnp.float32),
        grid=(Bp // tile_b,),
        in_specs=[
            pl.BlockSpec((tile_b, Dp), lambda i: (i, 0)),    # activation slab
            full((Dp, Dp)), full((1, Dp)),
            full((Dp, Hp)), full((1, Hp)),
            full((Hp, Hp)), full((1, Hp)),
            full((Hp, Hp)), full((1, Hp)),
            full((1, Hp)), full((1, 1)),
        ],
        out_specs=pl.BlockSpec((1, tile_b), lambda i: (0, i)),
        compiler_params=pltpu.CompilerParams(
            # Batch axis shards across TensorCores (2 TCs on v7x) whenever
            # Bp // tile_b >= 2.
            dimension_semantics=("parallel",)),
        cost_estimate=pl.CostEstimate(flops=flops,
                                      transcendentals=transcendentals,
                                      bytes_accessed=bytes_accessed),
    )(x, w1, b1, w2, b2, w3, b3, w4, b4, w5, b5)

    # torch.flatten(x) on a (B, 1) tensor -> (B,)
    return out[0, :B]


def nnmf_reference(params, user, item):
    """Pure-JAX f32 reference mirroring the PyTorch forward."""
    pu = params["p"][user]
    qi = params["q"][item]
    uv = params["u"][user] * params["v"][item]
    x = jnp.concatenate([pu, qi, uv], axis=1)
    x = jax.nn.sigmoid(x @ params["w1"] + params["b1"])
    x = jax.nn.sigmoid(x @ params["w2"] + params["b2"])
    x = jax.nn.sigmoid(x @ params["w3"] + params["b3"])
    x = jax.nn.sigmoid(x @ params["w4"] + params["b4"])
    x = x @ params["w5"] + params["b5"]
    return x.reshape(-1)


if __name__ == "__main__":
    num_user, num_item = 40, 60
    num_factor_1, num_factor_2, hidden = 100, 100, 50
    batch = 8

    key = jax.random.PRNGKey(0)
    kp, ku, ki = jax.random.split(key, 3)
    params = init_params(kp, num_user, num_item, num_factor_1, num_factor_2,
                         hidden)

    user = jax.random.randint(ku, (batch,), 0, num_user, dtype=jnp.int32)
    item = jax.random.randint(ki, (batch,), 0, num_item, dtype=jnp.int32)

    out = jax.jit(nnmf_forward)(params, user, item)
    out = jax.block_until_ready(out)

    # Reference in f32 on the same bf16-quantized tables/weights the kernel
    # uses (biases and w5 stay f32 in both).
    bf = lambda a: a.astype(jnp.bfloat16).astype(jnp.float32)
    params_q = dict(params)
    for k in ("p", "q", "u", "v", "w1", "w2", "w3", "w4"):
        params_q[k] = bf(params[k])
    ref = nnmf_reference(params_q, user, item)

    assert out.shape == (batch,)
    assert jnp.allclose(out, ref, atol=5e-4, rtol=5e-3), (out, ref)

    print("KERNEL_OK")
</pallas_src>

<mosaic_0001>
module attributes {stable_mosaic.version = 11 : i64} {
  func.func @nnmf_mlp_kernel(%arg0: i32, %arg1: memref<128x384xbf16, #tpu.memory_space<vmem>>, %arg2: memref<384x384xbf16, #tpu.memory_space<vmem>>, %arg3: memref<1x384xf32, #tpu.memory_space<vmem>>, %arg4: memref<384x128xbf16, #tpu.memory_space<vmem>>, %arg5: memref<1x128xf32, #tpu.memory_space<vmem>>, %arg6: memref<128x128xbf16, #tpu.memory_space<vmem>>, %arg7: memref<1x128xf32, #tpu.memory_space<vmem>>, %arg8: memref<128x128xbf16, #tpu.memory_space<vmem>>, %arg9: memref<1x128xf32, #tpu.memory_space<vmem>>, %arg10: memref<1x128xf32, #tpu.memory_space<vmem>>, %arg11: memref<1x1xf32, #tpu.memory_space<vmem>>, %arg12: memref<1x128xf32, #tpu.memory_space<vmem>>) attributes {dimension_semantics = [#tpu.dimension_semantics<parallel>], iteration_bounds = array<i64: 1>, scalar_prefetch = 0 : i64, scratch_operands = 0 : i64, tpu.core_type = #tpu.core_type<tc>, window_params = [{transform_indices = @transform_0, window_bounds = array<i64: 128, 384>}, {pipeline_mode = #tpu.pipeline_mode<synchronous>, transform_indices = @transform_1, window_bounds = array<i64: 384, 384>}, {pipeline_mode = #tpu.pipeline_mode<synchronous>, transform_indices = @transform_2, window_bounds = array<i64: 1, 384>}, {pipeline_mode = #tpu.pipeline_mode<synchronous>, transform_indices = @transform_3, window_bounds = array<i64: 384, 128>}, {pipeline_mode = #tpu.pipeline_mode<synchronous>, transform_indices = @transform_4, window_bounds = array<i64: 1, 128>}, {pipeline_mode = #tpu.pipeline_mode<synchronous>, transform_indices = @transform_5, window_bounds = array<i64: 128, 128>}, {pipeline_mode = #tpu.pipeline_mode<synchronous>, transform_indices = @transform_6, window_bounds = array<i64: 1, 128>}, {pipeline_mode = #tpu.pipeline_mode<synchronous>, transform_indices = @transform_7, window_bounds = array<i64: 128, 128>}, {pipeline_mode = #tpu.pipeline_mode<synchronous>, transform_indices = @transform_8, window_bounds = array<i64: 1, 128>}, {pipeline_mode = #tpu.pipeline_mode<synchronous>, transform_indices = @transform_9, window_bounds = array<i64: 1, 128>}, {pipeline_mode = #tpu.pipeline_mode<synchronous>, transform_indices = @transform_10, window_bounds = array<i64: 1, 1>}, {transform_indices = @transform_11, window_bounds = array<i64: 1, 128>}]} {
    %c0 = arith.constant 0 : index
    %c0_0 = arith.constant 0 : index
    %0 = vector.load %arg1[%c0, %c0_0] : memref<128x384xbf16, #tpu.memory_space<vmem>>, vector<128x384xbf16>
    %c0_1 = arith.constant 0 : index
    %c0_2 = arith.constant 0 : index
    %1 = vector.load %arg2[%c0_1, %c0_2] : memref<384x384xbf16, #tpu.memory_space<vmem>>, vector<384x384xbf16>
    %cst = arith.constant dense<0.000000e+00> : vector<128x384xf32>
    %2 = tpu.matmul %0, %1, %cst {dimension_numbers = #tpu.dot_dimension_numbers<[1], [0], [0], [1], [0, 0, 1, 1], [], []>} : vector<128x384xbf16>, vector<384x384xbf16>, vector<128x384xf32> -> vector<128x384xf32>
    %c0_3 = arith.constant 0 : index
    %c0_4 = arith.constant 0 : index
    %3 = vector.load %arg3[%c0_3, %c0_4] : memref<1x384xf32, #tpu.memory_space<vmem>>, vector<1x384xf32>
    %4 = vector.broadcast %3 : vector<1x384xf32> to vector<128x384xf32>
    %5 = arith.addf %2, %4 : vector<128x384xf32>
    %cst_5 = arith.constant 5.000000e-01 : f32
    %6 = vector.broadcast %cst_5 : f32 to vector<128x384xf32>
    %7 = arith.mulf %6, %5 : vector<128x384xf32>
    %8 = math.tanh %7 : vector<128x384xf32>
    %cst_6 = arith.constant 5.000000e-01 : f32
    %9 = vector.broadcast %cst_6 : f32 to vector<128x384xf32>
    %10 = arith.mulf %9, %8 : vector<128x384xf32>
    %cst_7 = arith.constant 5.000000e-01 : f32
    %11 = vector.broadcast %cst_7 : f32 to vector<128x384xf32>
    %12 = arith.addf %10, %11 : vector<128x384xf32>
    %13 = arith.truncf %12 : vector<128x384xf32> to vector<128x384xbf16>
    %c0_8 = arith.constant 0 : index
    %c0_9 = arith.constant 0 : index
    %14 = vector.load %arg4[%c0_8, %c0_9] : memref<384x128xbf16, #tpu.memory_space<vmem>>, vector<384x128xbf16>
    %cst_10 = arith.constant dense<0.000000e+00> : vector<128x128xf32>
    %15 = tpu.matmul %13, %14, %cst_10 {dimension_numbers = #tpu.dot_dimension_numbers<[1], [0], [0], [1], [0, 0, 1, 1], [], []>} : vector<128x384xbf16>, vector<384x128xbf16>, vector<128x128xf32> -> vector<128x128xf32>
    %c0_11 = arith.constant 0 : index
    %c0_12 = arith.constant 0 : index
    %16 = vector.load %arg5[%c0_11, %c0_12] : memref<1x128xf32, #tpu.memory_space<vmem>>, vector<1x128xf32>
    %17 = vector.broadcast %16 : vector<1x128xf32> to vector<128x128xf32>
    %18 = arith.addf %15, %17 : vector<128x128xf32>
    %cst_13 = arith.constant 5.000000e-01 : f32
    %19 = vector.broadcast %cst_13 : f32 to vector<128x128xf32>
    %20 = arith.mulf %19, %18 : vector<128x128xf32>
    %21 = math.tanh %20 : vector<128x128xf32>
    %cst_14 = arith.constant 5.000000e-01 : f32
    %22 = vector.broadcast %cst_14 : f32 to vector<128x128xf32>
    %23 = arith.mulf %22, %21 : vector<128x128xf32>
    %cst_15 = arith.constant 5.000000e-01 : f32
    %24 = vector.broadcast %cst_15 : f32 to vector<128x128xf32>
    %25 = arith.addf %23, %24 : vector<128x128xf32>
    %26 = arith.truncf %25 : vector<128x128xf32> to vector<128x128xbf16>
    %c0_16 = arith.constant 0 : index
    %c0_17 = arith.constant 0 : index
    %27 = vector.load %arg6[%c0_16, %c0_17] : memref<128x128xbf16, #tpu.memory_space<vmem>>, vector<128x128xbf16>
    %cst_18 = arith.constant dense<0.000000e+00> : vector<128x128xf32>
    %28 = tpu.matmul %26, %27, %cst_18 {dimension_numbers = #tpu.dot_dimension_numbers<[1], [0], [0], [1], [0, 0, 1, 1], [], []>} : vector<128x128xbf16>, vector<128x128xbf16>, vector<128x128xf32> -> vector<128x128xf32>
    %c0_19 = arith.constant 0 : index
    %c0_20 = arith.constant 0 : index
    %29 = vector.load %arg7[%c0_19, %c0_20] : memref<1x128xf32, #tpu.memory_space<vmem>>, vector<1x128xf32>
    %30 = vector.broadcast %29 : vector<1x128xf32> to vector<128x128xf32>
    %31 = arith.addf %28, %30 : vector<128x128xf32>
    %cst_21 = arith.constant 5.000000e-01 : f32
    %32 = vector.broadcast %cst_21 : f32 to vector<128x128xf32>
    %33 = arith.mulf %32, %31 : vector<128x128xf32>
    %34 = math.tanh %33 : vector<128x128xf32>
    %cst_22 = arith.constant 5.000000e-01 : f32
    %35 = vector.broadcast %cst_22 : f32 to vector<128x128xf32>
    %36 = arith.mulf %35, %34 : vector<128x128xf32>
    %cst_23 = arith.constant 5.000000e-01 : f32
    %37 = vector.broadcast %cst_23 : f32 to vector<128x128xf32>
    %38 = arith.addf %36, %37 : vector<128x128xf32>
    %39 = arith.truncf %38 : vector<128x128xf32> to vector<128x128xbf16>
    %c0_24 = arith.constant 0 : index
    %c0_25 = arith.constant 0 : index
    %40 = vector.load %arg8[%c0_24, %c0_25] : memref<128x128xbf16, #tpu.memory_space<vmem>>, vector<128x128xbf16>
    %cst_26 = arith.constant dense<0.000000e+00> : vector<128x128xf32>
    %41 = tpu.matmul %39, %40, %cst_26 {dimension_numbers = #tpu.dot_dimension_numbers<[1], [0], [0], [1], [0, 0, 1, 1], [], []>} : vector<128x128xbf16>, vector<128x128xbf16>, vector<128x128xf32> -> vector<128x128xf32>
    %c0_27 = arith.constant 0 : index
    %c0_28 = arith.constant 0 : index
    %42 = vector.load %arg9[%c0_27, %c0_28] : memref<1x128xf32, #tpu.memory_space<vmem>>, vector<1x128xf32>
    %43 = vector.broadcast %42 : vector<1x128xf32> to vector<128x128xf32>
    %44 = arith.addf %41, %43 : vector<128x128xf32>
    %cst_29 = arith.constant 5.000000e-01 : f32
    %45 = vector.broadcast %cst_29 : f32 to vector<128x128xf32>
    %46 = arith.mulf %45, %44 : vector<128x128xf32>
    %47 = math.tanh %46 : vector<128x128xf32>
    %cst_30 = arith.constant 5.000000e-01 : f32
    %48 = vector.broadcast %cst_30 : f32 to vector<128x128xf32>
    %49 = arith.mulf %48, %47 : vector<128x128xf32>
    %cst_31 = arith.constant 5.000000e-01 : f32
    %50 = vector.broadcast %cst_31 : f32 to vector<128x128xf32>
    %51 = arith.addf %49, %50 : vector<128x128xf32>
    %c0_32 = arith.constant 0 : index
    %c0_33 = arith.constant 0 : index
    %52 = vector.load %arg10[%c0_32, %c0_33] : memref<1x128xf32, #tpu.memory_space<vmem>>, vector<1x128xf32>
    %53 = vector.broadcast %52 : vector<1x128xf32> to vector<128x128xf32>
    %54 = arith.mulf %51, %53 : vector<128x128xf32>
    %55 = tpu.transpose %54, [1, 0] : vector<128x128xf32> -> vector<128x128xf32>
    %cst_34 = arith.constant dense<0.000000e+00> : vector<128xf32>
    %56 = vector.multi_reduction <add>, %55, %cst_34 [0] : vector<128x128xf32> to vector<128xf32>
    %57 = vector.shape_cast %56 : vector<128xf32> to vector<1x128xf32>
    %c0_35 = arith.constant 0 : index
    %c0_36 = arith.constant 0 : index
    %58 = vector.load %arg11[%c0_35, %c0_36] : memref<1x1xf32, #tpu.memory_space<vmem>>, vector<1x1xf32>
    %59 = vector.broadcast %58 : vector<1x1xf32> to vector<1x128xf32>
    %60 = arith.addf %57, %59 : vector<1x128xf32>
    %c0_37 = arith.constant 0 : index
    %c0_38 = arith.constant 0 : index
    %61 = vector.load %arg12[%c0_37, %c0_38] : memref<1x128xf32, #tpu.memory_space<vmem>>, vector<1x128xf32>
    tpu.vector_store %arg12[%c0_37, %c0_38], %60 {strides = array<i32>} : memref<1x128xf32, #tpu.memory_space<vmem>>, vector<1x128xf32>,
    return
  }
  func.func @transform_0(%arg0: i32) -> (i32, i32) {
    %c0_i32 = arith.constant 0 : i32
    %c0_i32_0 = arith.constant 0 : i32
    return %arg0, %c0_i32 : i32, i32
  }
  func.func @transform_1(%arg0: i32) -> (i32, i32) {
    %c0_i32 = arith.constant 0 : i32
    %c0_i32_0 = arith.constant 0 : i32
    %c0_i32_1 = arith.constant 0 : i32
    return %c0_i32, %c0_i32_0 : i32, i32
  }
  func.func @transform_2(%arg0: i32) -> (i32, i32) {
    %c0_i32 = arith.constant 0 : i32
    %c0_i32_0 = arith.constant 0 : i32
    %c0_i32_1 = arith.constant 0 : i32
    return %c0_i32, %c0_i32_0 : i32, i32
  }
  func.func @transform_3(%arg0: i32) -> (i32, i32) {
    %c0_i32 = arith.constant 0 : i32
    %c0_i32_0 = arith.constant 0 : i32
    %c0_i32_1 = arith.constant 0 : i32
    return %c0_i32, %c0_i32_0 : i32, i32
  }
  func.func @transform_4(%arg0: i32) -> (i32, i32) {
    %c0_i32 = arith.constant 0 : i32
    %c0_i32_0 = arith.constant 0 : i32
    %c0_i32_1 = arith.constant 0 : i32
    return %c0_i32, %c0_i32_0 : i32, i32
  }
  func.func @transform_5(%arg0: i32) -> (i32, i32) {
    %c0_i32 = arith.constant 0 : i32
    %c0_i32_0 = arith.constant 0 : i32
    %c0_i32_1 = arith.constant 0 : i32
    return %c0_i32, %c0_i32_0 : i32, i32
  }
  func.func @transform_6(%arg0: i32) -> (i32, i32) {
    %c0_i32 = arith.constant 0 : i32
    %c0_i32_0 = arith.constant 0 : i32
    %c0_i32_1 = arith.constant 0 : i32
    return %c0_i32, %c0_i32_0 : i32, i32
  }
  func.func @transform_7(%arg0: i32) -> (i32, i32) {
    %c0_i32 = arith.constant 0 : i32
    %c0_i32_0 = arith.constant 0 : i32
    %c0_i32_1 = arith.constant 0 : i32
    return %c0_i32, %c0_i32_0 : i32, i32
  }
  func.func @transform_8(%arg0: i32) -> (i32, i32) {
    %c0_i32 = arith.constant 0 : i32
    %c0_i32_0 = arith.constant 0 : i32
    %c0_i32_1 = arith.constant 0 : i32
    return %c0_i32, %c0_i32_0 : i32, i32
  }
  func.func @transform_9(%arg0: i32) -> (i32, i32) {
    %c0_i32 = arith.constant 0 : i32
    %c0_i32_0 = arith.constant 0 : i32
    %c0_i32_1 = arith.constant 0 : i32
    return %c0_i32, %c0_i32_0 : i32, i32
  }
  func.func @transform_10(%arg0: i32) -> (i32, i32) {
    %c0_i32 = arith.constant 0 : i32
    %c0_i32_0 = arith.constant 0 : i32
    %c0_i32_1 = arith.constant 0 : i32
    return %c0_i32, %c0_i32_0 : i32, i32
  }
  func.func @transform_11(%arg0: i32) -> (i32, i32) {
    %c0_i32 = arith.constant 0 : i32
    %c0_i32_0 = arith.constant 0 : i32
    return %c0_i32, %arg0 : i32, i32
  }
}

</mosaic_0001>

<bundles_post_ra>
// kernel: nnmf_forward.1
= control target key start
LH: loop header
LB: loop body
LE: loop exit
PB: predicated region body
PF: predicated region fallthrough
CT: control target
= control target key end

     0   :  { %s4284_s1 = inlined_call_operand.vmem [shape: bf16[384,384], index: 1, kind: input, shape index: {}]   ;;  %s4285_s0 = inlined_call_operand.vmem [shape: bf16[128,384], index: 0, kind: input, shape index: {}]   ;;  %s4286_s2 = inlined_call_operand.vmem [shape: f32[1,384], index: 2, kind: input, shape index: {}]   ;;  %s4287_s3 = inlined_call_operand.vmem [shape: bf16[384,128], index: 3, kind: input, shape index: {}]   ;;  %s4288_s4 = inlined_call_operand.vmem [shape: f32[1,128], index: 4, kind: input, shape index: {}]   ;;  %s4289_s5 = inlined_call_operand.vmem [shape: bf16[128,128], index: 5, kind: input, shape index: {}]   ;;  %s4290_s6 = inlined_call_operand.vmem [shape: f32[1,128], index: 6, kind: input, shape index: {}]   ;;  %s4291_s7 = inlined_call_operand.vmem [shape: bf16[128,128], index: 7, kind: input, shape index: {}]   ;;  %s4292_s8 = inlined_call_operand.vmem [shape: f32[1,128], index: 8, kind: input, shape index: {}]   ;;  %s4293_s9 = inlined_call_operand.vmem [shape: f32[1,128], index: 9, kind: input, shape index: {}]   ;;  %s4294_s10 = inlined_call_operand.<no memory space> [shape: f32[1,1], index: 10, kind: input, shape index: {}]   ;;  %s4295_s11 = inlined_call_operand.vmem [shape: f32[1,128], index: 11, kind: output, shape index: {}]  }
   0x1   :  { %v2398_v0 = vld [vmem:[%s4284_s1 + $0xa8] sm:$0xf]  ;;  %v2806_v1 = vld [vmem:[%s4284_s1 + $0xb0] sm:$0xf0]  ;;  %v2386_v5 = vld [vmem:[%s4284_s1 + $0x90] sm:$0xf] }
   0x2   :  { %v2494_v2 = vld [vmem:[%s4284_s1 + $0x168] sm:$0xf]  ;;  %v2399_v3 = vor.u32 %v2806_v1, %v2398_v0  ;;  %v2830_v4 = vld [vmem:[%s4284_s1 + $0x170] sm:$0xf0]  ;;  %v2803_v6 = vld [vmem:[%s4284_s1 + $0x98] sm:$0xf0] }
   0x3   :  { %v2495_v7 = vor.u32 %v2830_v4, %v2494_v2  ;;  %v2482_v8 = vld [vmem:[%s4284_s1 + $0x150] sm:$0xf]  ;;  %v2827_v9 = vld [vmem:[%s4284_s1 + $0x158] sm:$0xf0]  ;;  %v2387_v10 = vor.u32 %v2803_v6, %v2386_v5  ;;  %v2374_v12 = vld [vmem:[%s4284_s1 + $0x78] sm:$0xf] }
   0x4   :  { %2896 = vmatpush.bf16.msra.mxu2 %v2399_v3  ;;  %688 = vmatpush.bf16.msra.mxu0 %v2399_v3  ;;  %v2483_v11 = vor.u32 %v2827_v9, %v2482_v8  ;;  %v2800_v13 = vld [vmem:[%s4284_s1 + $0x80] sm:$0xf0]  ;;  %v2470_v14 = vld [vmem:[%s4284_s1 + $0x138] sm:$0xf]  ;;  %v2362_v18 = vld [vmem:[%s4284_s1 + $0x60] sm:$0xf] }
   0x5   :  { %2904 = vmatpush.bf16.msra.mxu3 %v2495_v7  ;;  %737 = vmatpush.bf16.msra.mxu1 %v2495_v7  ;;  %v2824_v15 = vld [vmem:[%s4284_s1 + $0x140] sm:$0xf0]  ;;  %v2375_v16 = vor.u32 %v2800_v13, %v2374_v12  ;;  %v2797_v19 = vld [vmem:[%s4284_s1 + $0x68] sm:$0xf0]  ;;  %v2458_v20 = vld [vmem:[%s4284_s1 + $0x120] sm:$0xf] }
   0x6   :  { %v2471_v17 = vor.u32 %v2824_v15, %v2470_v14  ;;  %v2821_v21 = vld [vmem:[%s4284_s1 + $0x128] sm:$0xf0]  ;;  %v2363_v22 = vor.u32 %v2797_v19, %v2362_v18  ;;  %v2350_v24 = vld [vmem:[%s4284_s1 + $0x48] sm:$0xf]  ;;  %v2794_v25 = vld [vmem:[%s4284_s1 + $0x50] sm:$0xf0] }
   0x7   :  { %v2459_v23 = vor.u32 %v2821_v21, %v2458_v20  ;;  %v2446_v26 = vld [vmem:[%s4284_s1 + $0x108] sm:$0xf]  ;;  %v2818_v27 = vld [vmem:[%s4284_s1 + $0x110] sm:$0xf0]  ;;  %v2351_v28 = vor.u32 %v2794_v25, %v2350_v24  ;;  %v2338_v30 = vld [vmem:[%s4284_s1 + $0x30] sm:$0xf] }
   0x8   :  { %2897 = vmatpush.bf16.msra.mxu2 %v2387_v10  ;;  %689 = vmatpush.bf16.msra.mxu0 %v2387_v10  ;;  %v2447_v29 = vor.u32 %v2818_v27, %v2446_v26  ;;  %v2791_v31 = vld [vmem:[%s4284_s1 + $0x38] sm:$0xf0]  ;;  %v2434_v32 = vld [vmem:[%s4284_s1 + $0xf0] sm:$0xf]  ;;  %v2326_v36 = vld [vmem:[%s4284_s1 + $0x18] sm:$0xf] }
   0x9   :  { %2905 = vmatpush.bf16.msra.mxu3 %v2483_v11  ;;  %738 = vmatpush.bf16.msra.mxu1 %v2483_v11  ;;  %v2815_v33 = vld [vmem:[%s4284_s1 + $0xf8] sm:$0xf0]  ;;  %v2339_v34 = vor.u32 %v2791_v31, %v2338_v30  ;;  %v2788_v37 = vld [vmem:[%s4284_s1 + $0x20] sm:$0xf0]  ;;  %v2422_v38 = vld [vmem:[%s4284_s1 + $0xd8] sm:$0xf] }
   0xa   :  { %v2435_v35 = vor.u32 %v2815_v33, %v2434_v32  ;;  %v2812_v39 = vld [vmem:[%s4284_s1 + $0xe0] sm:$0xf0]  ;;  %v2327_v40 = vor.u32 %v2788_v37, %v2326_v36  ;;  %v2314_v41 = vld [vmem:[%s4284_s1] sm:$0xf]  ;;  %v2785_v43 = vld [vmem:[%s4284_s1 + $0x8] sm:$0xf0] }
   0xb   :  { %v2423_v42 = vor.u32 %v2812_v39, %v2422_v38  ;;  %v2410_v44 = vld [vmem:[%s4284_s1 + $0xc0] sm:$0xf]  ;;  %v2809_v45 = vld [vmem:[%s4284_s1 + $0xc8] sm:$0xf0]  ;;  %v2590_v48 = vld [vmem:[%s4284_s1 + $0x228] sm:$0xf]  ;;  %v2315_v53 = vor.u32 %v2785_v43, %v2314_v41 }
   0xc   :  { %2898 = vmatpush.bf16.msra.mxu2 %v2375_v16  ;;  %690 = vmatpush.bf16.msra.mxu0 %v2375_v16  ;;  %v2266_v46 = vld [vmem:[%s4285_s0 + $0x60] sm:$0xf]  ;;  %v2773_v47 = vld [vmem:[%s4285_s0 + $0x68] sm:$0xf0]  ;;  %v2854_v49 = vld [vmem:[%s4284_s1 + $0x230] sm:$0xf0]  ;;  %v2411_v57 = vor.u32 %v2809_v45, %v2410_v44 }
   0xd   :  { %2906 = vmatpush.bf16.msra.mxu3 %v2471_v17  ;;  %739 = vmatpush.bf16.msra.mxu1 %v2471_v17  ;;  %v2772_v50 = vld [vmem:[%s4285_s0 + $0x64] sm:$0xf]  ;;  %v2805_v51 = vld [vmem:[%s4284_s1 + $0xac] sm:$0xf]  ;;  %v2400_v52 = vld [vmem:[%s4284_s1 + $0xb4] sm:$0xf0]  ;;  %v2591_v58 = vor.u32 %v2854_v49, %v2590_v48  ;;  %v3316_v2 = vor.u32 %v2773_v47, %v2266_v46 }
   0xe   :  { %v2268_v54 = vld [vmem:[%s4285_s0 + $0x6c] sm:$0xf0]  ;;  %v2218_v55 = vld [vmem:[%s4285_s0] sm:$0xf]  ;;  %v2761_v56 = vld [vmem:[%s4285_s0 + $0x8] sm:$0xf0]  ;;  %v2403_v62 = vor.u32 %v2805_v51, %v2400_v52 }
   0xf   :  { %v2760_v59 = vld [vmem:[%s4285_s0 + $0x4] sm:$0xf]  ;;  %v2829_v60 = vld [vmem:[%s4284_s1 + $0x16c] sm:$0xf]  ;;  %v2496_v61 = vld [vmem:[%s4284_s1 + $0x174] sm:$0xf0]  ;;  %v3318_v3 = vor.u32 %v2761_v56, %v2218_v55  ;;  %v3326_v6 = vor.u32 %v2772_v50, %v2268_v54 }
  0x10   :  { %2899 = vmatpush.bf16.msra.mxu2 %v2363_v22  ;;  %691 = vmatpush.bf16.msra.mxu0 %v2363_v22  ;;  %v2220_v63 = vld [vmem:[%s4285_s0 + $0xc] sm:$0xf0]  ;;  %v2851_v1 = vld [vmem:[%s4284_s1 + $0x218] sm:$0xf0]  ;;  %v2802_v4 = vld [vmem:[%s4284_s1 + $0x94] sm:$0xf]  ;;  %v2499_v7 = vor.u32 %v2829_v60, %v2496_v61 }
  0x11   :  { %2907 = vmatpush.bf16.msra.mxu3 %v2459_v23  ;;  %740 = vmatpush.bf16.msra.mxu1 %v2459_v23  ;;  %v2578_v0 = vld [vmem:[%s4284_s1 + $0x210] sm:$0xf]  ;;  %v2388_v5 = vld [vmem:[%s4284_s1 + $0x9c] sm:$0xf0]  ;;  %v3328_v8 = vor.u32 %v2760_v59, %v2220_v63  ;;  %v2826_v10 = vld [vmem:[%s4284_s1 + $0x154] sm:$0xf] }
  0x12   :  { %v2579_v9 = vor.u32 %v2851_v1, %v2578_v0  ;;  %v2484_v11 = vld [vmem:[%s4284_s1 + $0x15c] sm:$0xf0]  ;;  %v2391_v12 = vor.u32 %v2802_v4, %v2388_v5  ;;  %v2566_v13 = vld [vmem:[%s4284_s1 + $0x1f8] sm:$0xf]  ;;  %v2848_v14 = vld [vmem:[%s4284_s1 + $0x200] sm:$0xf0] }
  0x13   :  { %v2799_v15 = vld [vmem:[%s4284_s1 + $0x7c] sm:$0xf]  ;;  %v2376_v16 = vld [vmem:[%s4284_s1 + $0x84] sm:$0xf0]  ;;  %v2487_v17 = vor.u32 %v2826_v10, %v2484_v11  ;;  %v2567_v18 = vor.u32 %v2848_v14, %v2566_v13  ;;  %v2554_v22 = vld [vmem:[%s4284_s1 + $0x1e0] sm:$0xf] }
  0x14   :  { %2900 = vmatpush.bf16.msra.mxu2 %v2351_v28  ;;  %692 = vmatpush.bf16.msra.mxu0 %v2351_v28  ;;  %v2823_v19 = vld [vmem:[%s4284_s1 + $0x13c] sm:$0xf]  ;;  %v2472_v20 = vld [vmem:[%s4284_s1 + $0x144] sm:$0xf0]  ;;  %v2379_v21 = vor.u32 %v2799_v15, %v2376_v16  ;;  %v2845_v23 = vld [vmem:[%s4284_s1 + $0x1e8] sm:$0xf0] }
  0x15   :  { %2908 = vmatpush.bf16.msra.mxu3 %v2447_v29  ;;  %741 = vmatpush.bf16.msra.mxu1 %v2447_v29  ;;  %v2796_v24 = vld [vmem:[%s4284_s1 + $0x64] sm:$0xf]  ;;  %v2364_v25 = vld [vmem:[%s4284_s1 + $0x6c] sm:$0xf0]  ;;  %v2475_v26 = vor.u32 %v2823_v19, %v2472_v20  ;;  %v2853_v29 = vld [vmem:[%s4284_s1 + $0x22c] sm:$0xf]  ;;  %v2555_v30 = vor.u32 %v2845_v23, %v2554_v22 }
  0x16   :  { %v2820_v27 = vld [vmem:[%s4284_s1 + $0x124] sm:$0xf]  ;;  %v2460_v28 = vld [vmem:[%s4284_s1 + $0x12c] sm:$0xf0]  ;;  %v2592_v31 = vld [vmem:[%s4284_s1 + $0x234] sm:$0xf0]  ;;  %v2367_v36 = vor.u32 %v2796_v24, %v2364_v25 }
  0x17   :  { %v2850_v32 = vld [vmem:[%s4284_s1 + $0x214] sm:$0xf]  ;;  %v2580_v33 = vld [vmem:[%s4284_s1 + $0x21c] sm:$0xf0]  ;;  %v2542_v37 = vld [vmem:[%s4284_s1 + $0x1c8] sm:$0xf]  ;;  %v2595_v39 = vor.u32 %v2853_v29, %v2592_v31  ;;  %v2463_v46 = vor.u32 %v2820_v27, %v2460_v28 }
  0x18   :  { %2901 = vmatpush.bf16.msra.mxu2 %v2339_v34  ;;  %693 = vmatpush.bf16.msra.mxu0 %v2339_v34  ;;  %v2278_v34 = vld [vmem:[%s4285_s0 + $0x78] sm:$0xf]  ;;  %v2842_v38 = vld [vmem:[%s4284_s1 + $0x1d0] sm:$0xf0]  ;;  %v2793_v41 = vld [vmem:[%s4284_s1 + $0x4c] sm:$0xf]  ;;  %v2583_v47 = vor.u32 %v2850_v32, %v2580_v33 }
  0x19   :  { %2909 = vmatpush.bf16.msra.mxu3 %v2435_v35  ;;  %742 = vmatpush.bf16.msra.mxu1 %v2435_v35  ;;  %v2776_v35 = vld [vmem:[%s4285_s0 + $0x80] sm:$0xf0]  ;;  %v2280_v43 = vld [vmem:[%s4285_s0 + $0x84] sm:$0xf0]  ;;  %v2230_v44 = vld [vmem:[%s4285_s0 + $0x18] sm:$0xf]  ;;  %v2543_v49 = vor.u32 %v2842_v38, %v2542_v37 }
  0x1a   :  { %v2764_v45 = vld [vmem:[%s4285_s0 + $0x20] sm:$0xf0]  ;;  %v2763_v48 = vld [vmem:[%s4285_s0 + $0x1c] sm:$0xf]  ;;  %v2817_v50 = vld [vmem:[%s4284_s1 + $0x10c] sm:$0xf]  ;;  %v3436_v56 = vor.u32 %v2776_v35, %v2278_v34 }
  0x1b   :  { %v2448_v51 = vld [vmem:[%s4284_s1 + $0x114] sm:$0xf0]  ;;  %v2232_v52 = vld [vmem:[%s4285_s0 + $0x24] sm:$0xf0]  ;;  %v2530_v54 = vld [vmem:[%s4284_s1 + $0x1b0] sm:$0xf] }
  0x1c   :  { %2902 = vmatpush.bf16.msra.mxu2 %v2327_v40  ;;  %694 = vmatpush.bf16.msra.mxu0 %v2327_v40  ;;  %v2775_v40 = vld [vmem:[%s4285_s0 + $0x7c] sm:$0xf]  ;;  %v2340_v59 = vld [vmem:[%s4284_s1 + $0x3c] sm:$0xf0]  ;;  %v2451_v61 = vor.u32 %v2817_v50, %v2448_v51  ;;  %v2518_v1 = vld [vmem:[%s4284_s1 + $0x198] sm:$0xf] }
  0x1d   :  { %2910 = vmatpush.bf16.msra.mxu3 %v2423_v42  ;;  %743 = vmatpush.bf16.msra.mxu1 %v2423_v42  ;;  %v2352_v42 = vld [vmem:[%s4284_s1 + $0x54] sm:$0xf0]  ;;  %v2839_v55 = vld [vmem:[%s4284_s1 + $0x1b8] sm:$0xf0]  ;;  %v3446_v60 = vor.u32 %v2775_v40, %v2280_v43  ;;  %v2836_v4 = vld [vmem:[%s4284_s1 + $0x1a0] sm:$0xf0] }
  0x1e   :  { %v2531_v63 = vor.u32 %v2839_v55, %v2530_v54  ;;  %v2787_v5 = vld [vmem:[%s4284_s1 + $0x1c] sm:$0xf]  ;;  %v2814_v10 = vld [vmem:[%s4284_s1 + $0xf4] sm:$0xf]  ;;  %v2436_v11 = vld [vmem:[%s4284_s1 + $0xfc] sm:$0xf0] }
  0x1f   :  { %v2439_v13 = vor.u32 %v2814_v10, %v2436_v11  ;;  %v2847_v14 = vld [vmem:[%s4284_s1 + $0x1fc] sm:$0xf]  ;;  %v2568_v15 = vld [vmem:[%s4284_s1 + $0x204] sm:$0xf0]  ;;  %v2506_v19 = vld [vmem:[%s4284_s1 + $0x180] sm:$0xf] }
  0x20   :  { %2903 = vmatpush.bf16.msra.mxu2 %v2315_v53  ;;  %695 = vmatpush.bf16.msra.mxu0 %v2315_v53  ;;  %v2355_v53 = vor.u32 %v2793_v41, %v2352_v42  ;;  %v2571_v16 = vor.u32 %v2847_v14, %v2568_v15  ;;  %v2833_v20 = vld [vmem:[%s4284_s1 + $0x188] sm:$0xf0]  ;;  %v2316_v24 = vld [vmem:[%s4284_s1 + $0xc] sm:$0xf0]  ;;  %v2811_v25 = vld [vmem:[%s4284_s1 + $0xdc] sm:$0xf] }
  0x21   :  { %2911 = vmatpush.bf16.msra.mxu3 %v2411_v57  ;;  %744 = vmatpush.bf16.msra.mxu1 %v2411_v57  ;;  %v3438_v57 = vor.u32 %v2764_v45, %v2230_v44  ;;  %v2507_v23 = vor.u32 %v2833_v20, %v2506_v19  ;;  %v2841_v29 = vld [vmem:[%s4284_s1 + $0x1cc] sm:$0xf]  ;;  %v2808_v31 = vld [vmem:[%s4284_s1 + $0xc4] sm:$0xf]  ;;  %v2290_v32 = vld [vmem:[%s4285_s0 + $0x90] sm:$0xf] }
  0x22   :  { %v2412_v33 = vld [vmem:[%s4284_s1 + $0xcc] sm:$0xf0]  ;;  %v2779_v34 = vld [vmem:[%s4285_s0 + $0x98] sm:$0xf0]  ;;  %v2778_v38 = vld [vmem:[%s4285_s0 + $0x94] sm:$0xf] }
  0x23   :  { %716 = vmatmul.bf16.vlgmr.msra.gmra.mxu2 %v3316_v2  ;;  %696 = vmatmul.bf16.vlgmr.msra.gmra.mxu0 %v3318_v3  ;;  %v2242_v35 = vld [vmem:[%s4285_s0 + $0x30] sm:$0xf]  ;;  %v2415_v37 = vor.u32 %v2808_v31, %v2412_v33  ;;  %v2766_v41 = vld [vmem:[%s4285_s0 + $0x34] sm:$0xf]  ;;  %v2244_v42 = vld [vmem:[%s4285_s0 + $0x3c] sm:$0xf0]  ;;  %v3538_v43 = vor.u32 %v2779_v34, %v2290_v32 }
  0x24   :  { %786 = vmatpush.bf16.msrb.mxu2 %v2591_v58  ;;  %765 = vmatmul.bf16.vlgmr.msra.gmra.mxu3 %v3326_v6  ;;  %v2790_v58 = vld [vmem:[%s4284_s1 + $0x34] sm:$0xf]  ;;  %v2406_v50 = vld [vmem:[%s4284_s1 + $0xb0] sm:$0xf]  ;;  %v2807_v51 = vld [vmem:[%s4284_s1 + $0xb8] sm:$0xf0] }
  0x25   :  { %835 = vmatpush.bf16.msrb.mxu3 %v2403_v62  ;;  %884 = vmatpush.bf16.msrb.mxu0 %v2499_v7  ;;  %v3448_v62 = vor.u32 %v2763_v48, %v2232_v52  ;;  %v2343_v0 = vor.u32 %v2790_v58, %v2340_v59  ;;  %v2519_v7 = vor.u32 %v2836_v4, %v2518_v1  ;;  %v2838_v45 = vld [vmem:[%s4284_s1 + $0x1b4] sm:$0xf]  ;;  %v2502_v52 = vld [vmem:[%s4284_s1 + $0x170] sm:$0xf]  ;;  %v2831_v54 = vld [vmem:[%s4284_s1 + $0x178] sm:$0xf0] }
  0x26   :  { %745 = vmatmul.bf16.vlgmr.msra.gmra.mxu1 %v3328_v8  ;;  %v3550_v48 = vor.u32 %v2766_v41, %v2244_v42  ;;  %v2835_v55 = vld [vmem:[%s4284_s1 + $0x19c] sm:$0xf]  ;;  %v2520_v58 = vld [vmem:[%s4284_s1 + $0x1a4] sm:$0xf0]  ;;  %v2503_v59 = vor.u32 %v2831_v54, %v2502_v52  ;;  %v2508_v1 = vld [vmem:[%s4284_s1 + $0x18c] sm:$0xf0] }
  0x27   :  { %933 = vmatpush.bf16.msrb.mxu1 %v2595_v39  ;;  %v2292_v39 = vld [vmem:[%s4285_s0 + $0x9c] sm:$0xf0]  ;;  %v2855_v4 = vld [vmem:[%s4284_s1 + $0x238] sm:$0xf0]  ;;  %v2782_v10 = vld [vmem:[%s4285_s0 + $0xb0] sm:$0xf0] }
  0x28   :  { %787 = vmatpush.bf16.msrb.mxu2 %v2579_v9  ;;  %v2328_v9 = vld [vmem:[%s4284_s1 + $0x24] sm:$0xf0]  ;;  %v2304_v14 = vld [vmem:[%s4285_s0 + $0xb4] sm:$0xf0]  ;;  %v2769_v15 = vld [vmem:[%s4285_s0 + $0x4c] sm:$0xf] }
  0x29   :  { %836 = vmatpush.bf16.msrb.mxu3 %v2391_v12  ;;  %885 = vmatpush.bf16.msrb.mxu0 %v2487_v17  ;;  %v2331_v12 = vor.u32 %v2787_v5, %v2328_v9  ;;  %v2844_v17 = vld [vmem:[%s4284_s1 + $0x1e4] sm:$0xf]  ;;  %v2302_v9 = vld [vmem:[%s4285_s0 + $0xa8] sm:$0xf]  ;;  %v2762_v31 = vld [vmem:[%s4285_s0 + $0x10] sm:$0xf0] }
  0x2a   :  { %v2254_v11 = vld [vmem:[%s4285_s0 + $0x48] sm:$0xf]  ;;  %v2382_v33 = vld [vmem:[%s4284_s1 + $0x80] sm:$0xf]  ;;  %v2801_v34 = vld [vmem:[%s4284_s1 + $0x88] sm:$0xf0] }
  0x2b   :  { %934 = vmatpush.bf16.msrb.mxu1 %v2583_v47  ;;  %v3548_v47 = vor.u32 %v2778_v38, %v2292_v39  ;;  %v2574_v38 = vld [vmem:[%s4284_s1 + $0x200] sm:$0xf]  ;;  %v2849_v39 = vld [vmem:[%s4284_s1 + $0x208] sm:$0xf0]  ;;  %v2562_v54 = vld [vmem:[%s4284_s1 + $0x1e8] sm:$0xf] }
  0x2c   :  { %788 = vmatpush.bf16.msrb.mxu2 %v2567_v18  ;;  %v2556_v18 = vld [vmem:[%s4284_s1 + $0x1ec] sm:$0xf0]  ;;  %v2575_v41 = vor.u32 %v2849_v39, %v2574_v38  ;;  %v2238_v42 = vld [vmem:[%s4285_s0 + $0x20] sm:$0xf]  ;;  %v2789_v39 = vld [vmem:[%s4284_s1 + $0x28] sm:$0xf0] }
  0x2d   :  { %837 = vmatpush.bf16.msrb.mxu3 %v2379_v21  ;;  %886 = vmatpush.bf16.msrb.mxu0 %v2475_v26  ;;  %v2784_v21 = vld [vmem:[%s4284_s1 + $0x4] sm:$0xf]  ;;  %v2559_v22 = vor.u32 %v2844_v17, %v2556_v18  ;;  %v2424_v26 = vld [vmem:[%s4284_s1 + $0xe4] sm:$0xf0]  ;;  %v3610_v17 = vor.u32 %v2782_v10, %v2302_v9  ;;  %v2819_v9 = vld [vmem:[%s4284_s1 + $0x118] sm:$0xf0] }
  0x2e   :  { %v2319_v27 = vor.u32 %v2784_v21, %v2316_v24  ;;  %v2427_v28 = vor.u32 %v2811_v25, %v2424_v26  ;;  %v2394_v21 = vld [vmem:[%s4284_s1 + $0x98] sm:$0xf]  ;;  %v2828_v25 = vld [vmem:[%s4284_s1 + $0x160] sm:$0xf0]  ;;  %v2334_v38 = vld [vmem:[%s4284_s1 + $0x20] sm:$0xf] }
  0x2f   :  { %935 = vmatpush.bf16.msrb.mxu1 %v2571_v16  ;;  %v2256_v16 = vld [vmem:[%s4285_s0 + $0x54] sm:$0xf0] }
  0x30   :  { %789 = vmatpush.bf16.msrb.mxu2 %v2555_v30  ;;  %v2544_v30 = vld [vmem:[%s4284_s1 + $0x1d4] sm:$0xf0]  ;;  %v3616_v20 = vor.u32 %v2769_v15, %v2256_v16 }
  0x31   :  { %838 = vmatpush.bf16.msrb.mxu3 %v2367_v36  ;;  %887 = vmatpush.bf16.msrb.mxu0 %v2463_v46  ;;  %v2767_v36 = vld [vmem:[%s4285_s0 + $0x38] sm:$0xf0]  ;;  %v2547_v40 = vor.u32 %v2841_v29, %v2544_v30  ;;  %v2532_v46 = vld [vmem:[%s4284_s1 + $0x1bc] sm:$0xf0]  ;;  %v2586_v26 = vld [vmem:[%s4284_s1 + $0x218] sm:$0xf] }
  0x32   :  { %v3540_v44 = vor.u32 %v2767_v36, %v2242_v35  ;;  %v2226_v30 = vld [vmem:[%s4285_s0 + $0x8] sm:$0xf]  ;;  %v2478_v35 = vld [vmem:[%s4284_s1 + $0x140] sm:$0xf]  ;;  %v2383_v36 = vor.u32 %v2801_v34, %v2382_v33 }
  0x33   :  { %721 = vmatmul.bf16.gmra.mxu2 %v3436_v56  ;;  %701 = vmatmul.bf16.gmra.mxu0 %v3438_v57  ;;  %v3646_v32 = vor.u32 %v2762_v31, %v2226_v30  ;;  %v2774_v30 = vld [vmem:[%s4285_s0 + $0x70] sm:$0xf0]  ;;  %v3771_v34 = vld [vmem:[%s4286_s2] sm:$0x7] }
  0x34   :  { %790 = vmatpush.bf16.msrb.mxu2 %v2543_v49  ;;  %770 = vmatmul.bf16.gmra.mxu3 %v3446_v60  ;;  %v2535_v49 = vor.u32 %v2838_v45, %v2532_v46  ;;  %v2765_v45 = vld [vmem:[%s4285_s0 + $0x28] sm:$0xf0]  ;;  %4297 = vst [vmem:[#allocation3_spill] sm:$0xff] %v3771_v34 }
  0x35   :  { %839 = vmatpush.bf16.msrb.mxu3 %v2355_v53  ;;  %888 = vmatpush.bf16.msrb.mxu0 %v2451_v61  ;;  %v2407_v53 = vor.u32 %v2807_v51, %v2406_v50  ;;  %v2523_v61 = vor.u32 %v2835_v55, %v2520_v58  ;;  %v3676_v46 = vor.u32 %v2765_v45, %v2238_v42  ;;  %v2798_v50 = vld [vmem:[%s4284_s1 + $0x70] sm:$0xf0]  ;;  %v2466_v51 = vld [vmem:[%s4284_s1 + $0x128] sm:$0xf]  ;;  %v2813_v42 = vld [vmem:[%s4284_s1 + $0xe8] sm:$0xf0] }
  0x36   :  { %750 = vmatmul.bf16.gmra.mxu1 %v3448_v62  ;;  %v2846_v55 = vld [vmem:[%s4284_s1 + $0x1f0] sm:$0xf0] }
  0x37   :  { %936 = vmatpush.bf16.msrb.mxu1 %v2559_v22  ;;  %v2804_v22 = vld [vmem:[%s4284_s1 + $0xa0] sm:$0xf0] }
  0x38   :  { %791 = vmatpush.bf16.msrb.mxu2 %v2531_v63  ;;  %v2598_v63 = vld [vmem:[%s4284_s1 + $0x230] sm:$0xf]  ;;  %v2395_v24 = vor.u32 %v2804_v22, %v2394_v21  ;;  %v2346_v21 = vld [vmem:[%s4284_s1 + $0x38] sm:$0xf]  ;;  %v2792_v22 = vld [vmem:[%s4284_s1 + $0x40] sm:$0xf0] }
  0x39   :  { %840 = vmatpush.bf16.msrb.mxu3 %v2343_v0  ;;  %889 = vmatpush.bf16.msrb.mxu0 %v2439_v13  ;;  %v2832_v0 = vld [vmem:[%s4284_s1 + $0x184] sm:$0xf]  ;;  %v2599_v5 = vor.u32 %v2855_v4, %v2598_v63  ;;  %v2781_v13 = vld [vmem:[%s4285_s0 + $0xac] sm:$0xf]  ;;  %v2795_v4 = vld [vmem:[%s4284_s1 + $0x58] sm:$0xf0] }
  0x3a   :  { %v3614_v19 = vor.u32 %v2781_v13, %v2304_v14  ;;  %v2768_v63 = vld [vmem:[%s4285_s0 + $0x40] sm:$0xf0]  ;;  %v2262_v13 = vld [vmem:[%s4285_s0 + $0x50] sm:$0xf]  ;;  %v2771_v14 = vld [vmem:[%s4285_s0 + $0x58] sm:$0xf0] }
  0x3b   :  { %937 = vmatpush.bf16.msrb.mxu1 %v2547_v40  ;;  %v3736_v16 = vor.u32 %v2771_v14, %v2262_v13  ;;  %v2786_v13 = vld [vmem:[%s4284_s1 + $0x10] sm:$0xf0]  ;;  %v2418_v14 = vld [vmem:[%s4284_s1 + $0xc8] sm:$0xf] }
  0x3c   :  { %792 = vmatpush.bf16.msrb.mxu2 %v2519_v7  ;;  %v2511_v7 = vor.u32 %v2832_v0, %v2508_v1  ;;  %v2358_v1 = vld [vmem:[%s4284_s1 + $0x50] sm:$0xf] }
  0x3d   :  { %841 = vmatpush.bf16.msrb.mxu3 %v2331_v12  ;;  %890 = vmatpush.bf16.msrb.mxu0 %v2427_v28  ;;  %v2770_v12 = vld [vmem:[%s4285_s0 + $0x50] sm:$0xf0] }
  0x3e   :  { %v3612_v18 = vor.u32 %v2770_v12, %v2254_v11  ;;  %v2550_v11 = vld [vmem:[%s4284_s1 + $0x1d0] sm:$0xf]  ;;  %v2843_v12 = vld [vmem:[%s4284_s1 + $0x1d8] sm:$0xf0] }
  0x3f   :  { %938 = vmatpush.bf16.msrb.mxu1 %v2535_v49  ;;  %v2370_v49 = vld [vmem:[%s4284_s1 + $0x68] sm:$0xf]  ;;  %v2551_v15 = vor.u32 %v2843_v12, %v2550_v11 }
  0x40   :  { %793 = vmatpush.bf16.msrb.mxu2 %v2507_v23  ;;  %v2490_v23 = vld [vmem:[%s4284_s1 + $0x158] sm:$0xf]  ;;  %v2371_v52 = vor.u32 %v2798_v50, %v2370_v49  ;;  %v2322_v12 = vld [vmem:[%s4284_s1 + $0x8] sm:$0xf] }
  0x41   :  { %842 = vmatpush.bf16.msrb.mxu3 %v2319_v27  ;;  %891 = vmatpush.bf16.msrb.mxu0 %v2415_v37  ;;  %v2852_v27 = vld [vmem:[%s4284_s1 + $0x220] sm:$0xf0]  ;;  %v2491_v28 = vor.u32 %v2828_v25, %v2490_v23  ;;  %v2825_v37 = vld [vmem:[%s4284_s1 + $0x148] sm:$0xf0]  ;;  %v2442_v23 = vld [vmem:[%s4284_s1 + $0xf8] sm:$0xf] }
  0x42   :  { %v2587_v29 = vor.u32 %v2852_v27, %v2586_v26  ;;  %v2479_v40 = vor.u32 %v2825_v37, %v2478_v35  ;;  %v2816_v25 = vld [vmem:[%s4284_s1 + $0x100] sm:$0xf0]  ;;  %v2538_v27 = vld [vmem:[%s4284_s1 + $0x1b8] sm:$0xf]  ;;  %v3778_v37 = vperm.slane %v3771_v34, 0 }
  0x43   :  { %726 = vmatmul.bf16.gmra.mxu2 %v3538_v43  ;;  %706 = vmatmul.bf16.gmra.mxu0 %v3540_v44  ;;  %v2443_v26 = vor.u32 %v2816_v25, %v2442_v23 }
  0x44   :  { %775 = vmatmul.bf16.gmra.mxu3 %v3548_v47  ;;  %982 = vmatpush.bf16.msra.mxu2 %v2407_v53  ;;  %v2822_v53 = vld [vmem:[%s4284_s1 + $0x130] sm:$0xf0] }
  0x45   :  { %1031 = vmatpush.bf16.msra.mxu3 %v2503_v59  ;;  %939 = vmatpush.bf16.msrb.mxu1 %v2523_v61  ;;  %v2467_v58 = vor.u32 %v2822_v53, %v2466_v51  ;;  %v2563_v59 = vor.u32 %v2846_v55, %v2562_v54  ;;  %v2250_v61 = vld [vmem:[%s4285_s0 + $0x38] sm:$0xf]  ;;  %v2526_v55 = vld [vmem:[%s4284_s1 + $0x1a0] sm:$0xf] }
  0x46   :  { %755 = vmatmul.bf16.gmra.mxu1 %v3550_v48  ;;  %1080 = vmatpush.bf16.msra.mxu0 %v2599_v5  ;;  %v3706_v0 = vor.u32 %v2768_v63, %v2250_v61  ;;  %v2454_v5 = vld [vmem:[%s4284_s1 + $0x110] sm:$0xf]  ;;  %v2777_v61 = vld [vmem:[%s4285_s0 + $0x88] sm:$0xf0] }
  0x47   :  { %v2455_v10 = vor.u32 %v2819_v9, %v2454_v5 }
  0x48   :  { %983 = vmatpush.bf16.msra.mxu2 %v2395_v24  ;;  %v2347_v24 = vor.u32 %v2792_v22, %v2346_v21  ;;  %v2810_v21 = vld [vmem:[%s4284_s1 + $0xd0] sm:$0xf0] }
  0x49   :  { %940 = vmatpush.bf16.msrb.mxu1 %v2511_v7  ;;  %1032 = vmatpush.bf16.msra.mxu3 %v2491_v28  ;;  %v2359_v7 = vor.u32 %v2795_v4, %v2358_v1  ;;  %v2840_v28 = vld [vmem:[%s4284_s1 + $0x1c0] sm:$0xf0]  ;;  %v2419_v23 = vor.u32 %v2810_v21, %v2418_v14  ;;  %v2783_v14 = vld [vmem:[%s4285_s0 + $0xb8] sm:$0xf0] }
  0x4a   :  { %1081 = vmatpush.bf16.msra.mxu0 %v2587_v29  ;;  %v2274_v29 = vld [vmem:[%s4285_s0 + $0x68] sm:$0xf]  ;;  %v2539_v31 = vor.u32 %v2840_v28, %v2538_v27 }
  0x4b   :  { %v3766_v33 = vor.u32 %v2774_v30, %v2274_v29  ;;  %v2514_v29 = vld [vmem:[%s4284_s1 + $0x188] sm:$0xf]  ;;  %v2834_v30 = vld [vmem:[%s4284_s1 + $0x190] sm:$0xf0] }
  0x4c   :  { %984 = vmatpush.bf16.msra.mxu2 %v2383_v36 }
  0x4d   :  { %1033 = vmatpush.bf16.msra.mxu3 %v2479_v40  ;;  %v2430_v40 = vld [vmem:[%s4284_s1 + $0xe0] sm:$0xf] }
  0x4e   :  { %1082 = vmatpush.bf16.msra.mxu0 %v2575_v41  ;;  %v2335_v41 = vor.u32 %v2789_v39, %v2334_v38  ;;  %v2431_v49 = vor.u32 %v2813_v42, %v2430_v40  ;;  %v2780_v38 = vld [vmem:[%s4285_s0 + $0xa0] sm:$0xf0]  ;;  %v2515_v39 = vor.u32 %v2834_v30, %v2514_v29  ;;  %v2859_v29 = vld [vmem:[%s4287_s3 + $0x18] sm:$0xff] }
  0x50   :  { %985 = vmatpush.bf16.msra.mxu2 %v2371_v52 }
  0x51   :  { %1034 = vmatpush.bf16.msra.mxu3 %v2467_v58  ;;  %v2837_v58 = vld [vmem:[%s4284_s1 + $0x1a8] sm:$0xf0] }
  0x52   :  { %1083 = vmatpush.bf16.msra.mxu0 %v2563_v59  ;;  %v2286_v59 = vld [vmem:[%s4285_s0 + $0x80] sm:$0xf]  ;;  %v2527_v63 = vor.u32 %v2837_v58, %v2526_v55  ;;  %v2862_v58 = vld [vmem:[%s4287_s3 + $0x30] sm:$0xff] }
  0x53   :  { %731 = vmatmul.bf16.gmra.mxu2 %v3610_v17  ;;  %711 = vmatmul.bf16.gmra.mxu0 %v3612_v18 }
  0x54   :  { %780 = vmatmul.bf16.gmra.mxu3 %v3614_v19  ;;  %986 = vmatpush.bf16.msra.mxu2 %v2359_v7  ;;  %v3816_v7 = vor.u32 %v2777_v61, %v2286_v59 }
  0x55   :  { %1035 = vmatpush.bf16.msra.mxu3 %v2455_v10 }
  0x56   :  { %760 = vmatmul.bf16.gmra.mxu1 %v3616_v20  ;;  %1084 = vmatpush.bf16.msra.mxu0 %v2551_v15  ;;  %v2323_v15 = vor.u32 %v2786_v13, %v2322_v12  ;;  %v2310_v13 = vld [vmem:[%s4285_s0 + $0xb0] sm:$0xf] }
  0x58   :  { %987 = vmatpush.bf16.msra.mxu2 %v2347_v24 }
  0x59   :  { %1036 = vmatpush.bf16.msra.mxu3 %v2443_v26 }
  0x5a   :  { %1085 = vmatpush.bf16.msra.mxu0 %v2539_v31  ;;  %v2298_v31 = vld [vmem:[%s4285_s0 + $0x98] sm:$0xf] }
  0x5c   :  { %988 = vmatpush.bf16.msra.mxu2 %v2335_v41 }
  0x5d   :  { %1037 = vmatpush.bf16.msra.mxu3 %v2431_v49 }
  0x5e   :  { %1086 = vmatpush.bf16.msra.mxu0 %v2527_v63 }
  0x60   :  { %989 = vmatpush.bf16.msra.mxu2 %v2323_v15  ;;  %v2860_v15 = vld [vmem:[%s4287_s3 + $0x20] sm:$0xff] }
  0x61   :  { %1038 = vmatpush.bf16.msra.mxu3 %v2419_v23 }
  0x62   :  { %1087 = vmatpush.bf16.msra.mxu0 %v2515_v39 }
  0x63   :  { %794 = vmatmul.bf16.vlgmr.msrb.gmra.mxu2 %v3646_v32  ;;  %892 = vmatmul.bf16.vlgmr.msrb.gmra.mxu0 %v3328_v8 }
  0x64   :  { %843 = vmatmul.bf16.vlgmr.msrb.gmra.mxu3 %v3318_v3 }
  0x66   :  { %941 = vmatmul.bf16.vlgmr.msrb.gmra.mxu1 %v3646_v32 }
  0x73   :  { %799 = vmatmul.bf16.gmra.mxu2 %v3676_v46  ;;  %897 = vmatmul.bf16.gmra.mxu0 %v3448_v62 }
  0x74   :  { %848 = vmatmul.bf16.gmra.mxu3 %v3438_v57 }
  0x76   :  { %946 = vmatmul.bf16.gmra.mxu1 %v3676_v46 }
  0x83   :  { %804 = vmatmul.bf16.gmra.mxu2 %v3706_v0  ;;  %902 = vmatmul.bf16.gmra.mxu0 %v3550_v48 }
  0x84   :  { %853 = vmatmul.bf16.gmra.mxu3 %v3540_v44 }
  0x86   :  { %951 = vmatmul.bf16.gmra.mxu1 %v3706_v0 }
  0x93   :  { %809 = vmatmul.bf16.gmra.mxu2 %v3736_v16  ;;  %907 = vmatmul.bf16.gmra.mxu0 %v3616_v20 }
  0x94   :  { %858 = vmatmul.bf16.gmra.mxu3 %v3612_v18 }
  0x96   :  { %956 = vmatmul.bf16.gmra.mxu1 %v3736_v16 }
  0xa0   :  { %v3773_v35 = vpop.f32.mrf.mxu0 }
  0xa3   :  { %v3775_v36 = vpop.f32.mrf.mxu1  ;;  %814 = vmatmul.bf16.gmra.mxu2 %v3766_v33  ;;  %912 = vmatmul.bf16.gmra.mxu0 %v3326_v6 }
  0xa4   :  { %863 = vmatmul.bf16.gmra.mxu3 %v3316_v2 }
  0xa6   :  { %961 = vmatmul.bf16.gmra.mxu1 %v3766_v33  ;;  %v717_v45 = vpop.f32.mrf.mxu2 }
  0xa7   :  { %v718_v50 = vadd.f32 %v717_v45, %v3778_v37  ;;  %v766_v51 = vpop.f32.mrf.mxu3  ;;  %v3860_v45 = vor.u32 %v2780_v38, %v2298_v31  ;;  %v2858_v38 = vld [vmem:[%s4287_s3 + $0x10] sm:$0xff] }
  0xa8   :  { %v3797_v52 = vpop.f32.mrf.mxu0 }
  0xa9   :  { %v3799_v53 = vadd.f32 %v766_v51, %v718_v50  ;;  %v2863_v50 = vld [vmem:[%s4287_s3 + $0x38] sm:$0xff] }
  0xaa   :  { %1541 = vmatpush.bf16.msra.mxu1 %v2863_v50  ;;  %v2857_v50 = vld [vmem:[%s4287_s3 + $0x8] sm:$0xff] }
  0xab   :  { %v3801_v54 = vpop.f32.mrf.mxu1 }
  0xae   :  { %v719_v1 = vpop.f32.mrf.mxu2  ;;  %1542 = vmatpush.bf16.msra.mxu1 %v2862_v58 }
  0xaf   :  { %v720_v4 = vadd.f32 %v719_v1, %v3778_v37  ;;  %v768_v5 = vpop.f32.mrf.mxu3 }
  0xb0   :  { %v3818_v9 = vpop.f32.mrf.mxu0 }
  0xb1   :  { %v3820_v10 = vadd.f32 %v768_v5, %v720_v4  ;;  %v2861_v4 = vld [vmem:[%s4287_s3 + $0x28] sm:$0xff] }
  0xb2   :  { %1543 = vmatpush.bf16.msra.mxu1 %v2861_v4 }
  0xb3   :  { %v3822_v11 = vpop.f32.mrf.mxu1  ;;  %819 = vmatmul.bf16.gmra.mxu2 %v3816_v7  ;;  %917 = vmatmul.bf16.gmra.mxu0 %v3446_v60 }
  0xb4   :  { %868 = vmatmul.bf16.gmra.mxu3 %v3436_v56 }
  0xb6   :  { %966 = vmatmul.bf16.gmra.mxu1 %v3816_v7  ;;  %v722_v22 = vpop.f32.mrf.mxu2 }
  0xb7   :  { %v723_v24 = vadd.f32 %v722_v22, %v3778_v37  ;;  %v771_v25 = vpop.f32.mrf.mxu3  ;;  %1544 = vmatpush.bf16.msra.mxu1 %v2860_v15  ;;  %v698_v15 = vadd.f32 %v3773_v35, %v3778_v37 }
  0xb8   :  { %v3841_v26 = vpop.f32.mrf.mxu0 }
  0xb9   :  { %v3843_v27 = vadd.f32 %v771_v25, %v723_v24  ;;  %v3898_v24 = vor.u32 %v2783_v14, %v2310_v13 }
  0xbb   :  { %v3845_v28 = vpop.f32.mrf.mxu1  ;;  %1545 = vmatpush.bf16.msra.mxu1 %v2859_v29  ;;  %v747_v29 = vadd.f32 %v3775_v36, %v698_v15 }
  0xbe   :  { %v724_v40 = vpop.f32.mrf.mxu2 }
  0xbf   :  { %v725_v41 = vadd.f32 %v724_v40, %v3778_v37  ;;  %v773_v42 = vpop.f32.mrf.mxu3  ;;  %1546 = vmatpush.bf16.msra.mxu1 %v2858_v38 }
  0xc0   :  { %v3862_v49 = vpop.f32.mrf.mxu0 }
  0xc1   :  { %v3867_v51 = vadd.f32 %v773_v42, %v725_v41 }
  0xc3   :  { %v3869_v55 = vpop.f32.mrf.mxu1  ;;  %824 = vmatmul.bf16.gmra.mxu2 %v3860_v45  ;;  %922 = vmatmul.bf16.gmra.mxu0 %v3548_v47 }
  0xc4   :  { %873 = vmatmul.bf16.gmra.mxu3 %v3538_v43  ;;  %1547 = vmatpush.bf16.msra.mxu1 %v2857_v50  ;;  %v700_v50 = vadd.f32 %v3797_v52, %v3778_v37  ;;  %v2871_v52 = vld [vmem:[%s4287_s3 + $0x78] sm:$0xff] }
  0xc5   :  { %1590 = vmatpush.bf16.msrb.mxu2 %v2871_v52 }
  0xc6   :  { %971 = vmatmul.bf16.gmra.mxu1 %v3860_v45  ;;  %v727_v59 = vpop.f32.mrf.mxu2 }
  0xc7   :  { %v728_v61 = vadd.f32 %v727_v59, %v3778_v37  ;;  %v776_v63 = vpop.f32.mrf.mxu3 }
  0xc8   :  { %v3879_v1 = vpop.f32.mrf.mxu0 }
  0xc9   :  { %v3884_v5 = vadd.f32 %v776_v63, %v728_v61  ;;  %v2856_v61 = vld [vmem:[%s4287_s3] sm:$0xff] }
  0xca   :  { %1548 = vmatpush.bf16.msra.mxu1 %v2856_v61 }
  0xcb   :  { %v3886_v12 = vpop.f32.mrf.mxu1 }
  0xce   :  { %v729_v21 = vpop.f32.mrf.mxu2 }
  0xcf   :  { %v730_v22 = vadd.f32 %v729_v21, %v3778_v37  ;;  %v778_v23 = vpop.f32.mrf.mxu3 }
  0xd0   :  { %v3900_v25 = vpop.f32.mrf.mxu0 }
  0xd1   :  { %v3905_v30 = vadd.f32 %v778_v23, %v730_v22  ;;  %v3938_v23 = vperm.slane %v3771_v34, 1 }
  0xd3   :  { %v3907_v31 = vpop.f32.mrf.mxu1  ;;  %829 = vmatmul.bf16.gmra.mxu2 %v3898_v24  ;;  %927 = vmatmul.bf16.gmra.mxu0 %v3614_v19 }
  0xd4   :  { %878 = vmatmul.bf16.gmra.mxu3 %v3610_v17 }
  0xd6   :  { %976 = vmatmul.bf16.gmra.mxu1 %v3898_v24  ;;  %v732_v39 = vpop.f32.mrf.mxu2 }
  0xd7   :  { %v733_v40 = vadd.f32 %v732_v39, %v3778_v37  ;;  %v781_v41 = vpop.f32.mrf.mxu3 }
  0xd8   :  { %v3917_v42 = vpop.f32.mrf.mxu0 }
  0xd9   :  { %v3922_v58 = vadd.f32 %v781_v41, %v733_v40 }
  0xdb   :  { %v3924_v59 = vpop.f32.mrf.mxu1 }
  0xde   :  { %v734_v63 = vpop.f32.mrf.mxu2 }
  0xdf   :  { %v735_v4 = vadd.f32 %v734_v63, %v3778_v37  ;;  %v783_v13 = vpop.f32.mrf.mxu3 }
  0xe0   :  { %v893_v14 = vpop.f32.mrf.mxu0 }
  0xe1   :  { %v3932_v21 = vadd.f32 %v783_v13, %v735_v4 }
  0xe3   :  { %v942_v22 = vpop.f32.mrf.mxu1  ;;  %990 = vmatmul.bf16.vlgmr.msra.gmra.mxu2 %v3318_v3  ;;  %1088 = vmatmul.bf16.vlgmr.msra.gmra.mxu0 %v3646_v32 }
  0xe4   :  { %1039 = vmatmul.bf16.vlgmr.msra.gmra.mxu3 %v3328_v8  ;;  %v749_v8 = vadd.f32 %v3801_v54, %v700_v50  ;;  %v2879_v54 = vld [vmem:[%s4287_s3 + $0xb8] sm:$0xff] }
  0xe5   :  { %1639 = vmatpush.bf16.msrb.mxu3 %v2879_v54 }
  0xe6   :  { %v795_v38 = vpop.f32.mrf.mxu2 }
  0xe7   :  { %v796_v39 = vadd.f32 %v795_v38, %v747_v29  ;;  %v844_v40 = vpop.f32.mrf.mxu3  ;;  %v703_v38 = vadd.f32 %v3818_v9, %v3778_v37 }
  0xe8   :  { %v845_v41 = vadd.f32 %v844_v40, %v3938_v23  ;;  %v895_v35 = vpop.f32.mrf.mxu0 }
  0xe9   :  { %v1129_v63 = vmul.f32 0.5, %v796_v39  ;;  %v752_v39 = vadd.f32 %v3822_v11, %v703_v38 }
  0xea   :  { %v894_v61 = vadd.f32 %v893_v14, %v845_v41 }
  0xeb   :  { %v944_v3 = vpop.f32.mrf.mxu1  ;;  %2919 = vtanh.f32 %v1129_v63 }
  0xec   :  { %v943_v32 = vadd.f32 %v942_v22, %v894_v61 }
  0xee   :  { %v797_v4 = vpop.f32.mrf.mxu2  ;;  %v1130_v36 = vmul.f32 0.5, %v943_v32 }
  0xef   :  { %v798_v13 = vadd.f32 %v797_v4, %v749_v8  ;;  %v846_v34 = vpop.f32.mrf.mxu3 }
  0xf0   :  { %v847_v15 = vadd.f32 %v846_v34, %v3938_v23  ;;  %v898_v29 = vpop.f32.mrf.mxu0 }
  0xf1   :  { %v1132_v40 = vmul.f32 0.5, %v798_v13  ;;  %v2920_v9 = vpop.eup %2919 }
  0xf2   :  { %v896_v14 = vadd.f32 %v895_v35, %v847_v15  ;;  %v1225_v35 = vmul.f32 0.5, %v2920_v9 }
  0xf3   :  { %v947_v22 = vpop.f32.mrf.mxu1  ;;  %2921 = vtanh.f32 %v1132_v40  ;;  %995 = vmatmul.bf16.gmra.mxu2 %v3438_v57  ;;  %1093 = vmatmul.bf16.gmra.mxu0 %v3676_v46  ;;  %v705_v46 = vadd.f32 %v3841_v26, %v3778_v37 }
  0xf4   :  { %2923 = vtanh.f32 %v1130_v36  ;;  %v945_v34 = vadd.f32 %v944_v3, %v896_v14  ;;  %1044 = vmatmul.bf16.gmra.mxu3 %v3448_v62  ;;  %v1273_v11 = vadd.f32 0.5, %v1225_v35  ;;  %v2870_v35 = vld [vmem:[%s4287_s3 + $0x70] sm:$0xff] }
  0xf5   :  { %v754_v40 = vadd.f32 %v3845_v28, %v705_v46  ;;  %1591 = vmatpush.bf16.msrb.mxu2 %v2870_v35 }
  0xf6   :  { %v1133_v41 = vmul.f32 0.5, %v945_v34  ;;  %v800_v50 = vpop.f32.mrf.mxu2 }
  0xf7   :  { %v801_v61 = vadd.f32 %v800_v50, %v752_v39  ;;  %v849_v63 = vpop.f32.mrf.mxu3 }
  0xf8   :  { %2925 = vtanh.f32 %v1133_v41  ;;  %v850_v32 = vadd.f32 %v849_v63, %v3938_v23  ;;  %v900_v57 = vpop.f32.mrf.mxu0 }
  0xf9   :  { %v2922_v8 = vpop.eup %2921  ;;  %v1135_v36 = vmul.f32 0.5, %v801_v61  ;;  %v708_v61 = vadd.f32 %v3862_v49, %v3778_v37 }
  0xfa   :  { %v2924_v3 = vpop.eup %2923  ;;  %v1228_v62 = vmul.f32 0.5, %v2922_v8  ;;  %v899_v4 = vadd.f32 %v898_v29, %v850_v32  ;;  %v2878_v32 = vld [vmem:[%s4287_s3 + $0xb0] sm:$0xff] }
  0xfb   :  { %v949_v13 = vpop.f32.mrf.mxu1  ;;  %v1226_v52 = vmul.f32 0.5, %v2924_v3  ;;  %2927 = vtanh.f32 %v1135_v36  ;;  %1640 = vmatpush.bf16.msrb.mxu3 %v2878_v32 }
  0xfc   :  { %v1276_v15 = vadd.f32 0.5, %v1228_v62  ;;  %v948_v38 = vadd.f32 %v947_v22, %v899_v4  ;;  %v757_v4 = vadd.f32 %v3869_v55, %v708_v61 }
  0xfd   :  { %v3965_v63 = vadd.f32 0.5, %v1226_v52 }
  0xfe   :  { %v2926_v54 = vpop.eup %2925  ;;  %v1321_v14 = vpack.c.bf16 %v1276_v15, %v1273_v11  ;;  %v802_v34 = vpop.f32.mrf.mxu2  ;;  %v1136_v50 = vmul.f32 0.5, %v948_v38 }
  0xff   :  { %v1229_v9 = vmul.f32 0.5, %v2926_v54  ;;  %v803_v39 = vadd.f32 %v802_v34, %v754_v40  ;;  %v851_v41 = vpop.f32.mrf.mxu3 }
 0x100   :  { %v852_v26 = vadd.f32 %v851_v41, %v3938_v23  ;;  %1549 = vmatmul.bf16.vlgmr.msra.gmra.mxu1 %v1321_v14  ;;  %v903_v29 = vpop.f32.mrf.mxu0 }
 0x101   :  { %v3967_v22 = vadd.f32 0.5, %v1229_v9  ;;  %v1138_v28 = vmul.f32 0.5, %v803_v39  ;;  %v2928_v62 = vpop.eup %2927 }
 0x102   :  { %v901_v8 = vadd.f32 %v900_v57, %v852_v26  ;;  %v1231_v38 = vmul.f32 0.5, %v2928_v62  ;;  %v713_v62 = vadd.f32 %v3900_v25, %v3778_v37 }
 0x103   :  { %v1322_v46 = vpack.c.bf16 %v3967_v22, %v3965_v63  ;;  %2929 = vtanh.f32 %v1138_v28  ;;  %1000 = vmatmul.bf16.gmra.mxu2 %v3540_v44  ;;  %1098 = vmatmul.bf16.gmra.mxu0 %v3706_v0  ;;  %v952_v49 = vpop.f32.mrf.mxu1 }
 0x104   :  { %2931 = vtanh.f32 %v1136_v50  ;;  %v950_v3 = vadd.f32 %v949_v13, %v901_v8  ;;  %1049 = vmatmul.bf16.gmra.mxu3 %v3550_v48  ;;  %v710_v13 = vadd.f32 %v3879_v1, %v3778_v37  ;;  %v1279_v34 = vadd.f32 0.5, %v1231_v38 }
 0x106   :  { %v1139_v36 = vmul.f32 0.5, %v950_v3  ;;  %v805_v57 = vpop.f32.mrf.mxu2  ;;  %v759_v39 = vadd.f32 %v3886_v12, %v710_v13 }
 0x107   :  { %v806_v11 = vadd.f32 %v805_v57, %v757_v4  ;;  %v854_v15 = vpop.f32.mrf.mxu3  ;;  %v2877_v57 = vld [vmem:[%s4287_s3 + $0xa8] sm:$0xff] }
 0x108   :  { %2933 = vtanh.f32 %v1139_v36  ;;  %v855_v44 = vadd.f32 %v854_v15, %v3938_v23  ;;  %v905_v40 = vpop.f32.mrf.mxu0  ;;  %v2869_v36 = vld [vmem:[%s4287_s3 + $0x68] sm:$0xff]  ;;  %1641 = vmatpush.bf16.msrb.mxu3 %v2877_v57 }
 0x109   :  { %v2930_v0 = vpop.eup %2929  ;;  %v1141_v14 = vmul.f32 0.5, %v806_v11  ;;  %1592 = vmatpush.bf16.msrb.mxu2 %v2869_v36 }
 0x10a   :  { %v2932_v52 = vpop.eup %2931  ;;  %v1234_v48 = vmul.f32 0.5, %v2930_v0  ;;  %v904_v54 = vadd.f32 %v903_v29, %v855_v44  ;;  %v762_v44 = vadd.f32 %v3907_v31, %v713_v62 }
 0x10b   :  { %v1232_v41 = vmul.f32 0.5, %v2932_v52  ;;  %v954_v50 = vpop.f32.mrf.mxu1  ;;  %2935 = vtanh.f32 %v1141_v14 }
 0x10c   :  { %v1282_v55 = vadd.f32 0.5, %v1234_v48  ;;  %v953_v9 = vadd.f32 %v952_v49, %v904_v54 }
 0x10d   :  { %v3988_v49 = vadd.f32 0.5, %v1232_v41 }
 0x10e   :  { %v2934_v26 = vpop.eup %2933  ;;  %v807_v61 = vpop.f32.mrf.mxu2  ;;  %v1324_v28 = vpack.c.bf16 %v1282_v55, %v1279_v34  ;;  %v1142_v3 = vmul.f32 0.5, %v953_v9  ;;  %v715_v34 = vadd.f32 %v3917_v42, %v3778_v37 }
 0x10f   :  { %v1235_v35 = vmul.f32 0.5, %v2934_v26  ;;  %v808_v32 = vadd.f32 %v807_v61, %v759_v39  ;;  %v856_v8 = vpop.f32.mrf.mxu3 }
 0x110   :  { %v857_v1 = vadd.f32 %v856_v8, %v3938_v23  ;;  %1554 = vmatmul.bf16.gmra.mxu1 %v1324_v28  ;;  %v908_v29 = vpop.f32.mrf.mxu0  ;;  %v764_v26 = vadd.f32 %v3924_v59, %v715_v34  ;;  %v2868_v59 = vld [vmem:[%s4287_s3 + $0x60] sm:$0xff] }
 0x111   :  { %v3990_v12 = vadd.f32 0.5, %v1235_v35  ;;  %v1144_v4 = vmul.f32 0.5, %v808_v32  ;;  %v2936_v38 = vpop.eup %2935  ;;  %1593 = vmatpush.bf16.msrb.mxu2 %v2868_v59 }
 0x112   :  { %v906_v11 = vadd.f32 %v905_v40, %v857_v1 }
 0x113   :  { %2937 = vtanh.f32 %v1144_v4  ;;  %1005 = vmatmul.bf16.gmra.mxu2 %v3612_v18  ;;  %1103 = vmatmul.bf16.gmra.mxu0 %v3736_v16  ;;  %v1325_v25 = vpack.c.bf16 %v3990_v12, %v3988_v49  ;;  %v957_v48 = vpop.f32.mrf.mxu1  ;;  %v1237_v18 = vmul.f32 0.5, %v2936_v38 }
 0x114   :  { %2939 = vtanh.f32 %v1142_v3  ;;  %v955_v15 = vadd.f32 %v954_v50, %v906_v11  ;;  %1054 = vmatmul.bf16.gmra.mxu3 %v3616_v20  ;;  %v2876_v11 = vld [vmem:[%s4287_s3 + $0xa0] sm:$0xff] }
 0x115   :  { %v1285_v31 = vadd.f32 0.5, %v1237_v18  ;;  %1642 = vmatpush.bf16.msrb.mxu3 %v2876_v11 }
 0x116   :  { %v1145_v0 = vmul.f32 0.5, %v955_v15  ;;  %v810_v13 = vpop.f32.mrf.mxu2 }
 0x117   :  { %v811_v40 = vadd.f32 %v810_v13, %v762_v44  ;;  %v859_v52 = vpop.f32.mrf.mxu3 }
 0x118   :  { %2941 = vtanh.f32 %v1145_v0  ;;  %v860_v16 = vadd.f32 %v859_v52, %v3938_v23  ;;  %v910_v54 = vpop.f32.mrf.mxu0 }
 0x119   :  { %v2938_v14 = vpop.eup %2937  ;;  %v1147_v39 = vmul.f32 0.5, %v811_v40 }
 0x11a   :  { %v2940_v20 = vpop.eup %2939  ;;  %v1240_v55 = vmul.f32 0.5, %v2938_v14  ;;  %v909_v9 = vadd.f32 %v908_v29, %v860_v16 }
 0x11b   :  { %v1238_v61 = vmul.f32 0.5, %v2940_v20  ;;  %2943 = vtanh.f32 %v1147_v39  ;;  %v959_v57 = vpop.f32.mrf.mxu1 }
 0x11c   :  { %v1288_v41 = vadd.f32 0.5, %v1240_v55  ;;  %v958_v50 = vadd.f32 %v957_v48, %v909_v9 }
 0x11d   :  { %v4009_v29 = vadd.f32 0.5, %v1238_v61 }
 0x11e   :  { %v2942_v28 = vpop.eup %2941  ;;  %v812_v35 = vpop.f32.mrf.mxu2  ;;  %v1327_v32 = vpack.c.bf16 %v1288_v41, %v1285_v31  ;;  %v1148_v62 = vmul.f32 0.5, %v958_v50 }
 0x11f   :  { %v1241_v8 = vmul.f32 0.5, %v2942_v28  ;;  %v813_v3 = vadd.f32 %v812_v35, %v764_v26  ;;  %v861_v1 = vpop.f32.mrf.mxu3 }
 0x120   :  { %v862_v37 = vadd.f32 %v861_v1, %v3938_v23  ;;  %1559 = vmatmul.bf16.gmra.mxu1 %v1327_v32  ;;  %v913_v42 = vpop.f32.mrf.mxu0 }
 0x121   :  { %v4011_v4 = vadd.f32 0.5, %v1241_v8  ;;  %v1150_v36 = vmul.f32 0.5, %v813_v3  ;;  %v2944_v0 = vpop.eup %2943  ;;  %v2867_v8 = vld [vmem:[%s4287_s3 + $0x58] sm:$0xff] }
 0x122   :  { %v911_v15 = vadd.f32 %v910_v54, %v862_v37  ;;  %v1243_v18 = vmul.f32 0.5, %v2944_v0  ;;  %v2875_v3 = vld [vmem:[%s4287_s3 + $0x98] sm:$0xff]  ;;  %1594 = vmatpush.bf16.msrb.mxu2 %v2867_v8 }
 0x123   :  { %2945 = vtanh.f32 %v1150_v36  ;;  %1010 = vmatmul.bf16.gmra.mxu2 %v3316_v2  ;;  %1108 = vmatmul.bf16.gmra.mxu0 %v3766_v33  ;;  %v1328_v38 = vpack.c.bf16 %v4011_v4, %v4009_v29  ;;  %v2866_v36 = vld [vmem:[%s4287_s3 + $0x50] sm:$0xff]  ;;  %v962_v63 = vpop.f32.mrf.mxu1 }
 0x124   :  { %2947 = vtanh.f32 %v1148_v62  ;;  %v960_v44 = vadd.f32 %v959_v57, %v911_v15  ;;  %1059 = vmatmul.bf16.gmra.mxu3 %v3326_v6  ;;  %v1291_v20 = vadd.f32 0.5, %v1243_v18  ;;  %v2864_v18 = vld [vmem:[%s4287_s3 + $0x40] sm:$0xff] }
 0x125   :  { %1643 = vmatpush.bf16.msrb.mxu3 %v2875_v3 }
 0x126   :  { %v1151_v13 = vmul.f32 0.5, %v960_v44  ;;  %v815_v40 = vpop.f32.mrf.mxu2  ;;  %1595 = vmatpush.bf16.msrb.mxu2 %v2866_v36 }
 0x127   :  { %v816_v52 = vadd.f32 %v815_v40, %v3799_v53  ;;  %v864_v48 = vpop.f32.mrf.mxu3 }
 0x128   :  { %2949 = vtanh.f32 %v1151_v13  ;;  %v865_v2 = vadd.f32 %v864_v48, %v3938_v23  ;;  %v4026_v33 = vpop.f32.mrf.mxu0 }
 0x129   :  { %v2946_v16 = vpop.eup %2945  ;;  %v1153_v6 = vmul.f32 0.5, %v816_v52 }
 0x12a   :  { %v2948_v54 = vpop.eup %2947  ;;  %v1246_v14 = vmul.f32 0.5, %v2946_v16  ;;  %v4028_v34 = vadd.f32 %v913_v42, %v865_v2 }
 0x12b   :  { %v1244_v9 = vmul.f32 0.5, %v2948_v54  ;;  %2951 = vtanh.f32 %v1153_v6  ;;  %v2874_v54 = vld [vmem:[%s4287_s3 + $0x90] sm:$0xff] }
 0x12c   :  { %v1294_v55 = vadd.f32 0.5, %v1246_v14  ;;  %1644 = vmatpush.bf16.msrb.mxu3 %v2874_v54  ;;  %v963_v29 = vadd.f32 %v962_v63, %v4028_v34 }
 0x12d   :  { %v4033_v28 = vadd.f32 0.5, %v1244_v9 }
 0x12e   :  { %v2950_v39 = vpop.eup %2949  ;;  %v817_v31 = vpop.f32.mrf.mxu2  ;;  %v1330_v41 = vpack.c.bf16 %v1294_v55, %v1291_v20 }
 0x12f   :  { %v1247_v53 = vmul.f32 0.5, %v2950_v39  ;;  %v818_v50 = vadd.f32 %v817_v31, %v3820_v10  ;;  %v4031_v26 = vpop.f32.mrf.mxu3 }
 0x130   :  { %1564 = vmatmul.bf16.gmra.mxu1 %v1330_v41  ;;  %v918_v61 = vpop.f32.mrf.mxu0  ;;  %v867_v12 = vadd.f32 %v4031_v26, %v3938_v23 }
 0x131   :  { %v4035_v35 = vadd.f32 0.5, %v1247_v53  ;;  %v1156_v32 = vmul.f32 0.5, %v818_v50  ;;  %v2952_v1 = vpop.eup %2951 }
 0x132   :  { %v1249_v57 = vmul.f32 0.5, %v2952_v1  ;;  %v2873_v1 = vld [vmem:[%s4287_s3 + $0x88] sm:$0xff] }
 0x133   :  { %2953 = vtanh.f32 %v1156_v32  ;;  %1015 = vmatmul.bf16.gmra.mxu2 %v3436_v56  ;;  %1113 = vmatmul.bf16.gmra.mxu0 %v3816_v7  ;;  %v1331_v10 = vpack.c.bf16 %v4035_v35, %v4033_v28 }
 0x134   :  { %1064 = vmatmul.bf16.gmra.mxu3 %v3446_v60  ;;  %v1297_v44 = vadd.f32 0.5, %v1249_v57 }
 0x135   :  { %1645 = vmatpush.bf16.msrb.mxu3 %v2873_v1 }
 0x136   :  { %v820_v62 = vpop.f32.mrf.mxu2 }
 0x137   :  { %v821_v37 = vadd.f32 %v820_v62, %v3843_v27  ;;  %v869_v42 = vpop.f32.mrf.mxu3  ;;  %v2865_v27 = vld [vmem:[%s4287_s3 + $0x48] sm:$0xff] }
 0x138   :  { %v870_v56 = vadd.f32 %v869_v42, %v3938_v23  ;;  %v4053_v7 = vpop.f32.mrf.mxu0  ;;  %1596 = vmatpush.bf16.msrb.mxu2 %v2865_v27 }
 0x139   :  { %v2954_v59 = vpop.eup %2953  ;;  %v1159_v15 = vmul.f32 0.5, %v821_v37 }
 0x13a   :  { %v1252_v11 = vmul.f32 0.5, %v2954_v59  ;;  %v4055_v60 = vadd.f32 %v918_v61, %v870_v56 }
 0x13b   :  { %2955 = vtanh.f32 %v1159_v15 }
 0x13c   :  { %v1300_v0 = vadd.f32 0.5, %v1252_v11  ;;  %1597 = vmatpush.bf16.msrb.mxu2 %v2864_v18  ;;  %v4298_v18 = vld [vmem:[#allocation3_spill] sm:$0xff] }
 0x13e   :  { %v822_v13 = vpop.f32.mrf.mxu2  ;;  %v1333_v40 = vpack.c.bf16 %v1300_v0, %v1297_v44 }
 0x13f   :  { %v823_v52 = vadd.f32 %v822_v13, %v3867_v51  ;;  %v4061_v48 = vpop.f32.mrf.mxu3 }
 0x140   :  { %1569 = vmatmul.bf16.gmra.mxu1 %v1333_v40  ;;  %v923_v2 = vpop.f32.mrf.mxu0  ;;  %v2872_v40 = vld [vmem:[%s4287_s3 + $0x80] sm:$0xff] }
 0x141   :  { %v1162_v16 = vmul.f32 0.5, %v823_v52  ;;  %v2956_v51 = vpop.eup %2955  ;;  %1646 = vmatpush.bf16.msrb.mxu3 %v2872_v40 }
 0x142   :  { %v1255_v55 = vmul.f32 0.5, %v2956_v51 }
 0x143   :  { %2957 = vtanh.f32 %v1162_v16  ;;  %1020 = vmatmul.bf16.gmra.mxu2 %v3538_v43  ;;  %1118 = vmatmul.bf16.gmra.mxu0 %v3860_v45 }
 0x144   :  { %1069 = vmatmul.bf16.gmra.mxu3 %v3548_v47  ;;  %v1303_v50 = vadd.f32 0.5, %v1255_v55 }
 0x146   :  { %v825_v14 = vpop.f32.mrf.mxu2 }
 0x147   :  { %v826_v6 = vadd.f32 %v825_v14, %v3884_v5  ;;  %v874_v20 = vpop.f32.mrf.mxu3 }
 0x148   :  { %v875_v9 = vadd.f32 %v874_v20, %v3938_v23  ;;  %v4074_v39 = vpop.f32.mrf.mxu0 }
 0x149   :  { %v2958_v31 = vpop.eup %2957  ;;  %v1165_v43 = vmul.f32 0.5, %v826_v6 }
 0x14a   :  { %v1258_v41 = vmul.f32 0.5, %v2958_v31  ;;  %v4076_v53 = vadd.f32 %v923_v2, %v875_v9  ;;  %v4103_v2 = vperm.slane %v4298_v18, 2 }
 0x14b   :  { %2959 = vtanh.f32 %v1165_v43 }
 0x14c   :  { %v1306_v45 = vadd.f32 0.5, %v1258_v41 }
 0x14e   :  { %v827_v61 = vpop.f32.mrf.mxu2  ;;  %v1336_v47 = vpack.c.bf16 %v1306_v45, %v1303_v50 }
 0x14f   :  { %v828_v32 = vadd.f32 %v827_v61, %v3905_v30  ;;  %v4079_v8 = vpop.f32.mrf.mxu3 }
 0x150   :  { %1574 = vmatmul.bf16.gmra.mxu1 %v1336_v47  ;;  %v928_v5 = vpop.f32.mrf.mxu0 }
 0x151   :  { %v1168_v3 = vmul.f32 0.5, %v828_v32  ;;  %v2960_v62 = vpop.eup %2959 }
 0x152   :  { %v1261_v36 = vmul.f32 0.5, %v2960_v62 }
 0x153   :  { %2961 = vtanh.f32 %v1168_v3  ;;  %1025 = vmatmul.bf16.gmra.mxu2 %v3610_v17  ;;  %1123 = vmatmul.bf16.gmra.mxu0 %v3898_v24 }
 0x154   :  { %1074 = vmatmul.bf16.gmra.mxu3 %v3614_v19  ;;  %v1309_v27 = vadd.f32 0.5, %v1261_v36  ;;  %v964_v36 = vpop.f32.mrf.mxu1 }
 0x156   :  { %v830_v37 = vpop.f32.mrf.mxu2 }
 0x157   :  { %v831_v30 = vadd.f32 %v830_v37, %v3922_v58  ;;  %v879_v42 = vpop.f32.mrf.mxu3 }
 0x158   :  { %v880_v57 = vadd.f32 %v879_v42, %v3938_v23  ;;  %v4089_v56 = vpop.f32.mrf.mxu0 }
 0x159   :  { %v2962_v59 = vpop.eup %2961  ;;  %v1171_v17 = vmul.f32 0.5, %v831_v30 }
 0x15a   :  { %v1264_v11 = vmul.f32 0.5, %v2962_v59  ;;  %v4091_v15 = vadd.f32 %v928_v5, %v880_v57 }
 0x15b   :  { %2963 = vtanh.f32 %v1171_v17 }
 0x15c   :  { %v1312_v24 = vadd.f32 0.5, %v1264_v11  ;;  %v967_v18 = vpop.f32.mrf.mxu1 }
 0x15d   :  { %v968_v28 = vadd.f32 %v967_v18, %v4055_v60 }
 0x15e   :  { %v832_v44 = vpop.f32.mrf.mxu2  ;;  %v1339_v19 = vpack.c.bf16 %v1312_v24, %v1309_v27 }
 0x15f   :  { %v833_v0 = vadd.f32 %v832_v44, %v3932_v21  ;;  %v4094_v13 = vpop.f32.mrf.mxu3 }
 0x160   :  { %1579 = vmatmul.bf16.gmra.mxu1 %v1339_v19  ;;  %v1089_v58 = vpop.f32.mrf.mxu0 }
 0x161   :  { %v1174_v52 = vmul.f32 0.5, %v833_v0  ;;  %v2964_v16 = vpop.eup %2963 }
 0x162   :  { %v1267_v14 = vmul.f32 0.5, %v2964_v16 }
 0x163   :  { %2965 = vtanh.f32 %v1174_v52  ;;  %1598 = vmatmul.bf16.vlgmr.msrb.gmra.mxu2 %v1322_v46 }
 0x164   :  { %v1315_v41 = vadd.f32 0.5, %v1267_v14 }
 0x166   :  { %v991_v21 = vpop.f32.mrf.mxu2 }
 0x167   :  { %v992_v54 = vadd.f32 %v991_v21, %v4103_v2  ;;  %v1040_v51 = vpop.f32.mrf.mxu3  ;;  %v916_v21 = vadd.f32 %v4026_v33, %v867_v12 }
 0x168   :  { %v1091_v6 = vpop.f32.mrf.mxu0 }
 0x169   :  { %v2966_v20 = vpop.eup %2965  ;;  %v1041_v55 = vadd.f32 %v1040_v51, %v992_v54 }
 0x16a   :  { %v1270_v9 = vmul.f32 0.5, %v2966_v20 }
 0x16b   :  { %v1090_v31 = vadd.f32 %v1089_v58, %v1041_v55  ;;  %v2887_v55 = vld [vmem:[%s4289_s5 + $0x38] sm:$0xff] }
 0x16c   :  { %v1318_v43 = vadd.f32 0.5, %v1270_v9  ;;  %1828 = vmatpush.bf16.msrb.mxu0 %v2887_v55 }
 0x16d   :  { %v1131_v22 = vmul.f32 0.5, %v1090_v31 }
 0x16e   :  { %v993_v50 = vpop.f32.mrf.mxu2  ;;  %v1342_v45 = vpack.c.bf16 %v1318_v43, %v1315_v41  ;;  %v969_v43 = vpop.f32.mrf.mxu1 }
 0x16f   :  { %v994_v46 = vadd.f32 %v993_v50, %v4103_v2  ;;  %v1042_v61 = vpop.f32.mrf.mxu3  ;;  %2967 = vtanh.f32 %v1131_v22  ;;  %v1154_v50 = vmul.f32 0.5, %v963_v29 }
 0x170   :  { %1584 = vmatmul.bf16.gmra.mxu1 %v1342_v45  ;;  %v1094_v47 = vpop.f32.mrf.mxu0 }
 0x171   :  { %v1043_v32 = vadd.f32 %v1042_v61, %v994_v46 }
 0x173   :  { %v1092_v5 = vadd.f32 %v1091_v6, %v1043_v32  ;;  %1603 = vmatmul.bf16.gmra.mxu2 %v1325_v25  ;;  %v965_v6 = vadd.f32 %v964_v36, %v916_v21  ;;  %v872_v32 = vadd.f32 %v4061_v48, %v3938_v23 }
 0x175   :  { %v1134_v3 = vmul.f32 0.5, %v1092_v5  ;;  %v2968_v42 = vpop.eup %2967 }
 0x176   :  { %v996_v1 = vpop.f32.mrf.mxu2  ;;  %v1227_v11 = vmul.f32 0.5, %v2968_v42 }
 0x177   :  { %2969 = vtanh.f32 %v1134_v3  ;;  %v997_v62 = vadd.f32 %v996_v1, %v4103_v2  ;;  %v1045_v37 = vpop.f32.mrf.mxu3 }
 0x178   :  { %v1096_v30 = vpop.f32.mrf.mxu0  ;;  %v1275_v25 = vadd.f32 0.5, %v1227_v11 }
 0x179   :  { %v1046_v57 = vadd.f32 %v1045_v37, %v997_v62  ;;  %v921_v37 = vadd.f32 %v4053_v7, %v872_v32 }
 0x17b   :  { %v1095_v59 = vadd.f32 %v1094_v47, %v1046_v57  ;;  %v972_v57 = vpop.f32.mrf.mxu1 }
 0x17d   :  { %v2970_v17 = vpop.eup %2969  ;;  %v1137_v44 = vmul.f32 0.5, %v1095_v59 }
 0x17e   :  { %v1230_v27 = vmul.f32 0.5, %v2970_v17  ;;  %v998_v24 = vpop.f32.mrf.mxu2  ;;  %v970_v17 = vadd.f32 %v969_v43, %v921_v37 }
 0x17f   :  { %v999_v19 = vadd.f32 %v998_v24, %v4103_v2  ;;  %v1047_v49 = vpop.f32.mrf.mxu3  ;;  %2971 = vtanh.f32 %v1137_v44 }
 0x180   :  { %v1278_v0 = vadd.f32 0.5, %v1230_v27  ;;  %v1099_v58 = vpop.f32.mrf.mxu0  ;;  %v1163_v7 = vmul.f32 0.5, %v970_v17 }
 0x181   :  { %v1048_v40 = vadd.f32 %v1047_v49, %v999_v19 }
 0x182   :  { %v1323_v52 = vpack.c.bf16 %v1278_v0, %v1275_v25  ;;  %v1160_v0 = vmul.f32 0.5, %v968_v28 }
 0x183   :  { %v1097_v16 = vadd.f32 %v1096_v30, %v1048_v40  ;;  %1608 = vmatmul.bf16.gmra.mxu2 %v1328_v38  ;;  %v1157_v38 = vmul.f32 0.5, %v965_v6  ;;  %v974_v6 = vpop.f32.mrf.mxu1 }
 0x184   :  { %1647 = vmatmul.bf16.vlgmr.msrb.gmra.mxu3 %v1323_v52 }
 0x185   :  { %v1140_v54 = vmul.f32 0.5, %v1097_v16  ;;  %v2972_v9 = vpop.eup %2971 }
 0x186   :  { %v1001_v51 = vpop.f32.mrf.mxu2  ;;  %v1233_v33 = vmul.f32 0.5, %v2972_v9 }
 0x187   :  { %2973 = vtanh.f32 %v1140_v54  ;;  %v1002_v26 = vadd.f32 %v1001_v51, %v4103_v2  ;;  %v1050_v14 = vpop.f32.mrf.mxu3  ;;  %v877_v51 = vadd.f32 %v4079_v8, %v3938_v23 }
 0x188   :  { %v1101_v20 = vpop.f32.mrf.mxu0  ;;  %2975 = vtanh.f32 %v1157_v38  ;;  %v1281_v5 = vadd.f32 0.5, %v1233_v33 }
 0x189   :  { %v1051_v31 = vadd.f32 %v1050_v14, %v1002_v26  ;;  %2977 = vtanh.f32 %v1154_v50  ;;  %v2886_v14 = vld [vmem:[%s4289_s5 + $0x30] sm:$0xff]  ;;  %v926_v29 = vadd.f32 %v4074_v39, %v877_v51 }
 0x18a   :  { %1829 = vmatpush.bf16.msrb.mxu0 %v2886_v14 }
 0x18b   :  { %v1100_v4 = vadd.f32 %v1099_v58, %v1051_v31  ;;  %v975_v50 = vadd.f32 %v974_v6, %v926_v29 }
 0x18d   :  { %v2974_v41 = vpop.eup %2973  ;;  %v1143_v46 = vmul.f32 0.5, %v1100_v4  ;;  %v1169_v39 = vmul.f32 0.5, %v975_v50 }
 0x18e   :  { %v1003_v45 = vpop.f32.mrf.mxu2  ;;  %v1236_v22 = vmul.f32 0.5, %v2974_v41  ;;  %v2976_v42 = vpop.eup %2975 }
 0x18f   :  { %v1004_v61 = vadd.f32 %v1003_v45, %v4103_v2  ;;  %v1052_v47 = vpop.f32.mrf.mxu3  ;;  %2979 = vtanh.f32 %v1143_v46  ;;  %v2978_v11 = vpop.eup %2977  ;;  %v1253_v44 = vmul.f32 0.5, %v2976_v42 }
 0x190   :  { %v1104_v3 = vpop.f32.mrf.mxu0  ;;  %v1284_v34 = vadd.f32 0.5, %v1236_v22  ;;  %v1250_v35 = vmul.f32 0.5, %v2978_v11  ;;  %v882_v11 = vadd.f32 %v4094_v13, %v3938_v23 }
 0x191   :  { %v1053_v63 = vadd.f32 %v1052_v47, %v1004_v61  ;;  %v1301_v25 = vadd.f32 0.5, %v1253_v44  ;;  %v973_v47 = vadd.f32 %v972_v57, %v4076_v53 }
 0x192   :  { %v1326_v1 = vpack.c.bf16 %v1284_v34, %v1281_v5  ;;  %v1298_v52 = vadd.f32 0.5, %v1250_v35  ;;  %v977_v5 = vpop.f32.mrf.mxu1  ;;  %v931_v35 = vadd.f32 %v4089_v56, %v882_v11 }
 0x193   :  { %v1102_v62 = vadd.f32 %v1101_v20, %v1053_v63  ;;  %1613 = vmatmul.bf16.gmra.mxu2 %v1331_v10 }
 0x194   :  { %1652 = vmatmul.bf16.gmra.mxu3 %v1326_v1  ;;  %v1334_v55 = vpack.c.bf16 %v1301_v25, %v1298_v52 }
 0x195   :  { %v1146_v30 = vmul.f32 0.5, %v1102_v62  ;;  %v2980_v24 = vpop.eup %2979  ;;  %v1166_v62 = vmul.f32 0.5, %v973_v47 }
 0x196   :  { %v1006_v36 = vpop.f32.mrf.mxu2  ;;  %v1239_v49 = vmul.f32 0.5, %v2980_v24 }
 0x197   :  { %2981 = vtanh.f32 %v1146_v30  ;;  %v1007_v48 = vadd.f32 %v1006_v36, %v4103_v2  ;;  %v1055_v59 = vpop.f32.mrf.mxu3 }
 0x198   :  { %v1106_v27 = vpop.f32.mrf.mxu0  ;;  %2983 = vtanh.f32 %v1163_v7  ;;  %v1287_v26 = vadd.f32 0.5, %v1239_v49 }
 0x199   :  { %v1056_v19 = vadd.f32 %v1055_v59, %v1007_v48  ;;  %2985 = vtanh.f32 %v1160_v0 }
 0x19b   :  { %v1105_v10 = vadd.f32 %v1104_v3, %v1056_v19 }
 0x19d   :  { %v2982_v12 = vpop.eup %2981  ;;  %v1149_v16 = vmul.f32 0.5, %v1105_v10  ;;  %v979_v10 = vpop.f32.mrf.mxu1 }
 0x19e   :  { %v1008_v58 = vpop.f32.mrf.mxu2  ;;  %v1242_v40 = vmul.f32 0.5, %v2982_v12  ;;  %v2984_v4 = vpop.eup %2983  ;;  %v980_v0 = vadd.f32 %v979_v10, %v931_v35 }
 0x19f   :  { %v1009_v21 = vadd.f32 %v1008_v58, %v4103_v2  ;;  %v1057_v54 = vpop.f32.mrf.mxu3  ;;  %2987 = vtanh.f32 %v1149_v16  ;;  %v2986_v43 = vpop.eup %2985  ;;  %v1259_v46 = vmul.f32 0.5, %v2984_v4  ;;  %v978_v16 = vadd.f32 %v977_v5, %v4091_v15  ;;  %v2884_v15 = vld [vmem:[%s4289_s5 + $0x20] sm:$0xff] }
 0x1a0   :  { %v1109_v60 = vpop.f32.mrf.mxu0  ;;  %v1290_v18 = vadd.f32 0.5, %v1242_v40  ;;  %v1256_v32 = vmul.f32 0.5, %v2986_v43  ;;  %v1175_v56 = vmul.f32 0.5, %v980_v0 }
 0x1a1   :  { %v1058_v20 = vadd.f32 %v1057_v54, %v1009_v21  ;;  %v1307_v1 = vadd.f32 0.5, %v1259_v46  ;;  %v1172_v14 = vmul.f32 0.5, %v978_v16 }
 0x1a2   :  { %v1329_v9 = vpack.c.bf16 %v1290_v18, %v1287_v26  ;;  %v1304_v42 = vadd.f32 0.5, %v1256_v32 }
 0x1a3   :  { %v1107_v31 = vadd.f32 %v1106_v27, %v1058_v20  ;;  %1618 = vmatmul.bf16.gmra.mxu2 %v1334_v55  ;;  %v2885_v27 = vld [vmem:[%s4289_s5 + $0x28] sm:$0xff] }
 0x1a4   :  { %1657 = vmatmul.bf16.gmra.mxu3 %v1329_v9  ;;  %v1337_v44 = vpack.c.bf16 %v1307_v1, %v1304_v42  ;;  %1830 = vmatpush.bf16.msrb.mxu0 %v2885_v27  ;;  %v2883_v27 = vld [vmem:[%s4289_s5 + $0x18] sm:$0xff] }
 0x1a5   :  { %v1152_v8 = vmul.f32 0.5, %v1107_v31  ;;  %v2988_v22 = vpop.eup %2987 }
 0x1a6   :  { %v1011_v38 = vpop.f32.mrf.mxu2  ;;  %v1245_v34 = vmul.f32 0.5, %v2988_v22 }
 0x1a7   :  { %2989 = vtanh.f32 %v1152_v8  ;;  %v1012_v33 = vadd.f32 %v1011_v38, %v4103_v2  ;;  %v1060_v41 = vpop.f32.mrf.mxu3 }
 0x1a8   :  { %v1111_v45 = vpop.f32.mrf.mxu0  ;;  %2991 = vtanh.f32 %v1169_v39  ;;  %v1293_v53 = vadd.f32 0.5, %v1245_v34  ;;  %1831 = vmatpush.bf16.msrb.mxu0 %v2884_v15 }
 0x1a9   :  { %v1061_v61 = vadd.f32 %v1060_v41, %v1012_v33  ;;  %2993 = vtanh.f32 %v1166_v62 }
 0x1ab   :  { %v1110_v3 = vadd.f32 %v1109_v60, %v1061_v61 }
 0x1ac   :  { %1832 = vmatpush.bf16.msrb.mxu0 %v2883_v27 }
 0x1ad   :  { %v2990_v63 = vpop.eup %2989  ;;  %v1155_v36 = vmul.f32 0.5, %v1110_v3 }
 0x1ae   :  { %v1013_v37 = vpop.f32.mrf.mxu2  ;;  %v1248_v30 = vmul.f32 0.5, %v2990_v63  ;;  %v2992_v13 = vpop.eup %2991 }
 0x1af   :  { %v1014_v48 = vadd.f32 %v1013_v37, %v4103_v2  ;;  %v1062_v59 = vpop.f32.mrf.mxu3  ;;  %2995 = vtanh.f32 %v1155_v36  ;;  %v2994_v25 = vpop.eup %2993  ;;  %v1265_v40 = vmul.f32 0.5, %v2992_v13 }
 0x1b0   :  { %v1114_v57 = vpop.f32.mrf.mxu0  ;;  %v1296_v17 = vadd.f32 0.5, %v1248_v30  ;;  %v1262_v54 = vmul.f32 0.5, %v2994_v25 }
 0x1b1   :  { %v1063_v24 = vadd.f32 %v1062_v59, %v1014_v48  ;;  %v1313_v18 = vadd.f32 0.5, %v1265_v40 }
 0x1b2   :  { %v1332_v19 = vpack.c.bf16 %v1296_v17, %v1293_v53  ;;  %v1310_v55 = vadd.f32 0.5, %v1262_v54 }
 0x1b3   :  { %v1112_v28 = vadd.f32 %v1111_v45, %v1063_v24  ;;  %1623 = vmatmul.bf16.gmra.mxu2 %v1337_v44 }
 0x1b4   :  { %1662 = vmatmul.bf16.gmra.mxu3 %v1332_v19  ;;  %v1340_v33 = vpack.c.bf16 %v1313_v18, %v1310_v55 }
 0x1b5   :  { %v1158_v23 = vmul.f32 0.5, %v1112_v28  ;;  %v2996_v58 = vpop.eup %2995  ;;  %v2882_v28 = vld [vmem:[%s4289_s5 + $0x10] sm:$0xff] }
 0x1b6   :  { %v1016_v7 = vpop.f32.mrf.mxu2  ;;  %v1251_v26 = vmul.f32 0.5, %v2996_v58  ;;  %1833 = vmatpush.bf16.msrb.mxu0 %v2882_v28 }
 0x1b7   :  { %2997 = vtanh.f32 %v1158_v23  ;;  %v1017_v49 = vadd.f32 %v1016_v7, %v4103_v2  ;;  %v1065_v12 = vpop.f32.mrf.mxu3 }
 0x1b8   :  { %v1116_v21 = vpop.f32.mrf.mxu0  ;;  %2999 = vtanh.f32 %v1175_v56  ;;  %v1299_v8 = vadd.f32 0.5, %v1251_v26 }
 0x1b9   :  { %v1066_v52 = vadd.f32 %v1065_v12, %v1017_v49  ;;  %3001 = vtanh.f32 %v1172_v14 }
 0x1bb   :  { %v1115_v51 = vadd.f32 %v1114_v57, %v1066_v52 }
 0x1bd   :  { %v2998_v60 = vpop.eup %2997  ;;  %v1161_v9 = vmul.f32 0.5, %v1115_v51  ;;  %v2881_v51 = vld [vmem:[%s4289_s5 + $0x8] sm:$0xff] }
 0x1be   :  { %v1254_v6 = vmul.f32 0.5, %v2998_v60  ;;  %v1018_v20 = vpop.f32.mrf.mxu2  ;;  %v3000_v22 = vpop.eup %2999  ;;  %1834 = vmatpush.bf16.msrb.mxu0 %v2881_v51 }
 0x1bf   :  { %v1019_v31 = vadd.f32 %v1018_v20, %v4103_v2  ;;  %v1067_v29 = vpop.f32.mrf.mxu3  ;;  %3003 = vtanh.f32 %v1161_v9  ;;  %v3002_v32 = vpop.eup %3001  ;;  %v1271_v3 = vmul.f32 0.5, %v3000_v22  ;;  %v2880_v22 = vld [vmem:[%s4289_s5] sm:$0xff] }
 0x1c0   :  { %v1302_v4 = vadd.f32 0.5, %v1254_v6  ;;  %v1119_v50 = vpop.f32.mrf.mxu0  ;;  %v1268_v34 = vmul.f32 0.5, %v3002_v32  ;;  %v1550_v20 = vpop.f32.mrf.mxu1 }
 0x1c1   :  { %v1068_v38 = vadd.f32 %v1067_v29, %v1019_v31  ;;  %v1319_v37 = vadd.f32 0.5, %v1271_v3 }
 0x1c2   :  { %v1335_v41 = vpack.c.bf16 %v1302_v4, %v1299_v8  ;;  %v1316_v48 = vadd.f32 0.5, %v1268_v34  ;;  %1835 = vmatpush.bf16.msrb.mxu0 %v2880_v22 }
 0x1c3   :  { %v1117_v43 = vadd.f32 %v1116_v21, %v1068_v38  ;;  %1628 = vmatmul.bf16.gmra.mxu2 %v1340_v33 }
 0x1c4   :  { %1667 = vmatmul.bf16.gmra.mxu3 %v1335_v41  ;;  %v1343_v44 = vpack.c.bf16 %v1319_v37, %v1316_v48 }
 0x1c5   :  { %v1164_v45 = vmul.f32 0.5, %v1117_v43  ;;  %v3004_v5 = vpop.eup %3003 }
 0x1c6   :  { %v1021_v46 = vpop.f32.mrf.mxu2  ;;  %v1257_v1 = vmul.f32 0.5, %v3004_v5 }
 0x1c7   :  { %3005 = vtanh.f32 %v1164_v45  ;;  %v1022_v61 = vadd.f32 %v1021_v46, %v4103_v2  ;;  %v1070_v47 = vpop.f32.mrf.mxu3  ;;  %v4173_v46 = vld [vmem:[%s4288_s4] ss:$0 sm:$0xff] }
 0x1c8   :  { %v1121_v42 = vpop.f32.mrf.mxu0  ;;  %v1305_v57 = vadd.f32 0.5, %v1257_v1  ;;  %v1552_v4 = vpop.f32.mrf.mxu1  ;;  %v1551_v32 = vadd.f32 %v4173_v46, %v1550_v20 }
 0x1c9   :  { %v1071_v39 = vadd.f32 %v1070_v47, %v1022_v61 }
 0x1cb   :  { %v1120_v63 = vadd.f32 %v1119_v50, %v1071_v39 }
 0x1cd   :  { %v3006_v62 = vpop.eup %3005  ;;  %v1167_v59 = vmul.f32 0.5, %v1120_v63  ;;  %v1553_v63 = vadd.f32 %v4173_v46, %v1552_v4 }
 0x1ce   :  { %v1260_v30 = vmul.f32 0.5, %v3006_v62  ;;  %v1023_v36 = vpop.f32.mrf.mxu2 }
 0x1cf   :  { %v1024_v11 = vadd.f32 %v1023_v36, %v4103_v2  ;;  %v1072_v53 = vpop.f32.mrf.mxu3  ;;  %3007 = vtanh.f32 %v1167_v59 }
 0x1d0   :  { %v1308_v17 = vadd.f32 0.5, %v1260_v30  ;;  %v1124_v49 = vpop.f32.mrf.mxu0  ;;  %v1555_v50 = vpop.f32.mrf.mxu1 }
 0x1d1   :  { %v1073_v24 = vadd.f32 %v1072_v53, %v1024_v11  ;;  %v1556_v48 = vadd.f32 %v4173_v46, %v1555_v50 }
 0x1d2   :  { %v1338_v19 = vpack.c.bf16 %v1308_v17, %v1305_v57 }
 0x1d3   :  { %v1122_v35 = vadd.f32 %v1121_v42, %v1073_v24  ;;  %1633 = vmatmul.bf16.gmra.mxu2 %v1343_v44 }
 0x1d4   :  { %1672 = vmatmul.bf16.gmra.mxu3 %v1338_v19 }
 0x1d5   :  { %v1170_v10 = vmul.f32 0.5, %v1122_v35  ;;  %v3008_v12 = vpop.eup %3007 }
 0x1d6   :  { %v1026_v23 = vpop.f32.mrf.mxu2  ;;  %v1263_v58 = vmul.f32 0.5, %v3008_v12 }
 0x1d7   :  { %3009 = vtanh.f32 %v1170_v10  ;;  %v1027_v13 = vadd.f32 %v1026_v23, %v4103_v2  ;;  %v1075_v7 = vpop.f32.mrf.mxu3 }
 0x1d8   :  { %v1311_v56 = vadd.f32 0.5, %v1263_v58  ;;  %v1126_v14 = vpop.f32.mrf.mxu0  ;;  %v1557_v61 = vpop.f32.mrf.mxu1 }
 0x1d9   :  { %v1076_v25 = vadd.f32 %v1075_v7, %v1027_v13  ;;  %v1558_v28 = vadd.f32 %v4173_v46, %v1557_v61 }
 0x1db   :  { %v1125_v0 = vadd.f32 %v1124_v49, %v1076_v25 }
 0x1dd   :  { %v3010_v40 = vpop.eup %3009  ;;  %v1173_v21 = vmul.f32 0.5, %v1125_v0 }
 0x1de   :  { %v1266_v52 = vmul.f32 0.5, %v3010_v40  ;;  %v1028_v16 = vpop.f32.mrf.mxu2 }
 0x1df   :  { %v1029_v54 = vadd.f32 %v1028_v16, %v4103_v2  ;;  %v1077_v60 = vpop.f32.mrf.mxu3  ;;  %3011 = vtanh.f32 %v1173_v21 }
 0x1e0   :  { %v1314_v26 = vadd.f32 0.5, %v1266_v52  ;;  %v1560_v34 = vpop.f32.mrf.mxu1  ;;  %v2895_v52 = vld [vmem:[%s4291_s7 + $0x38] sm:$0xff] }
 0x1e1   :  { %v1078_v18 = vadd.f32 %v1077_v60, %v1029_v54  ;;  %v1561_v40 = vadd.f32 %v4173_v46, %v1560_v34  ;;  %2017 = vmatpush.bf16.msrb.mxu1 %v2895_v52 }
 0x1e2   :  { %v1341_v6 = vpack.c.bf16 %v1314_v26, %v1311_v56 }
 0x1e3   :  { %v1127_v55 = vadd.f32 %v1126_v14, %v1078_v18 }
 0x1e4   :  { %1677 = vmatmul.bf16.gmra.mxu3 %v1341_v6 }
 0x1e5   :  { %v1176_v9 = vmul.f32 0.5, %v1127_v55  ;;  %v3012_v29 = vpop.eup %3011 }
 0x1e6   :  { %v1599_v31 = vpop.f32.mrf.mxu2  ;;  %v1269_v2 = vmul.f32 0.5, %v3012_v29 }
 0x1e7   :  { %3013 = vtanh.f32 %v1176_v9  ;;  %v1600_v5 = vadd.f32 %v1599_v31, %v1551_v32 }
 0x1e8   :  { %v1317_v33 = vadd.f32 0.5, %v1269_v2  ;;  %v1562_v59 = vpop.f32.mrf.mxu1 }
 0x1e9   :  { %v1563_v6 = vadd.f32 %v4173_v46, %v1562_v59  ;;  %v2893_v59 = vld [vmem:[%s4291_s7 + $0x28] sm:$0xff] }
 0x1ed   :  { %v3014_v8 = vpop.eup %3013 }
 0x1ee   :  { %v1272_v15 = vmul.f32 0.5, %v3014_v8  ;;  %v1601_v38 = vpop.f32.mrf.mxu2 }
 0x1ef   :  { %v1602_v37 = vadd.f32 %v1601_v38, %v1553_v63 }
 0x1f0   :  { %v1320_v41 = vadd.f32 0.5, %v1272_v15  ;;  %v1565_v7 = vpop.f32.mrf.mxu1 }
 0x1f1   :  { %v1566_v38 = vadd.f32 %v4173_v46, %v1565_v7 }
 0x1f2   :  { %v1344_v43 = vpack.c.bf16 %v1320_v41, %v1317_v33  ;;  %v2894_v41 = vld [vmem:[%s4291_s7 + $0x30] sm:$0xff] }
 0x1f3   :  { %2018 = vmatpush.bf16.msrb.mxu1 %v2894_v41  ;;  %v2891_v41 = vld [vmem:[%s4291_s7 + $0x18] sm:$0xff] }
 0x1f4   :  { %1682 = vmatmul.bf16.gmra.mxu3 %v1344_v43 }
 0x1f6   :  { %v1604_v45 = vpop.f32.mrf.mxu2 }
 0x1f7   :  { %v1605_v53 = vadd.f32 %v1604_v45, %v1556_v48  ;;  %2019 = vmatpush.bf16.msrb.mxu1 %v2893_v59  ;;  %v2889_v59 = vld [vmem:[%s4291_s7 + $0x8] sm:$0xff] }
 0x1f8   :  { %v1567_v56 = vpop.f32.mrf.mxu1 }
 0x1fe   :  { %v1606_v47 = vpop.f32.mrf.mxu2 }
 0x1ff   :  { %v1607_v13 = vadd.f32 %v1606_v47, %v1558_v28 }
 0x200   :  { %v1570_v15 = vpop.f32.mrf.mxu1 }
 0x201   :  { %v1571_v48 = vadd.f32 %v4173_v46, %v1570_v15 }
 0x206   :  { %v1609_v62 = vpop.f32.mrf.mxu2 }
 0x207   :  { %v1648_v3 = vpop.f32.mrf.mxu3  ;;  %v1610_v21 = vadd.f32 %v1609_v62, %v1561_v40 }
 0x208   :  { %v1649_v39 = vadd.f32 %v1648_v3, %v1600_v5  ;;  %v1568_v5 = vadd.f32 %v4173_v46, %v1567_v56 }
 0x20a   :  { %v1688_v1 = vmul.f32 0.5, %v1649_v39  ;;  %v1572_v39 = vpop.f32.mrf.mxu1 }
 0x20c   :  { %3015 = vtanh.f32 %v1688_v1 }
 0x20e   :  { %v1611_v57 = vpop.f32.mrf.mxu2 }
 0x20f   :  { %v1650_v30 = vpop.f32.mrf.mxu3  ;;  %v1612_v31 = vadd.f32 %v1611_v57, %v1563_v6 }
 0x210   :  { %v1651_v42 = vadd.f32 %v1650_v30, %v1602_v37 }
 0x212   :  { %v1689_v36 = vmul.f32 0.5, %v1651_v42  ;;  %v3016_v11 = vpop.eup %3015  ;;  %v1575_v57 = vpop.f32.mrf.mxu1 }
 0x213   :  { %v1720_v24 = vmul.f32 0.5, %v3016_v11  ;;  %v1576_v52 = vadd.f32 %v4173_v46, %v1575_v57 }
 0x214   :  { %3017 = vtanh.f32 %v1689_v36 }
 0x215   :  { %v1736_v10 = vadd.f32 0.5, %v1720_v24 }
 0x216   :  { %v1614_v0 = vpop.f32.mrf.mxu2 }
 0x217   :  { %v1653_v17 = vpop.f32.mrf.mxu3  ;;  %v1615_v50 = vadd.f32 %v1614_v0, %v1566_v38 }
 0x218   :  { %v1654_v27 = vadd.f32 %v1653_v17, %v1605_v53 }
 0x21a   :  { %v3018_v44 = vpop.eup %3017  ;;  %v1690_v35 = vmul.f32 0.5, %v1654_v27  ;;  %v1577_v0 = vpop.f32.mrf.mxu1 }
 0x21b   :  { %v1721_v19 = vmul.f32 0.5, %v3018_v44  ;;  %v1578_v6 = vadd.f32 %v4173_v46, %v1577_v0 }
 0x21c   :  { %3019 = vtanh.f32 %v1690_v35  ;;  %v1573_v35 = vadd.f32 %v4173_v46, %v1572_v39 }
 0x21d   :  { %v1737_v23 = vadd.f32 0.5, %v1721_v19 }
 0x21e   :  { %v1616_v18 = vpop.f32.mrf.mxu2 }
 0x21f   :  { %v1752_v49 = vpack.c.bf16 %v1737_v23, %v1736_v10  ;;  %v1655_v12 = vpop.f32.mrf.mxu3  ;;  %v1617_v1 = vadd.f32 %v1616_v18, %v1568_v5 }
 0x220   :  { %v1656_v25 = vadd.f32 %v1655_v12, %v1607_v13 }
 0x221   :  { %1836 = vmatmul.bf16.vlgmr.msrb.gmra.mxu0 %v1752_v49 }
 0x222   :  { %v1691_v58 = vmul.f32 0.5, %v1656_v25  ;;  %v3020_v16 = vpop.eup %3019  ;;  %v1580_v18 = vpop.f32.mrf.mxu1 }
 0x223   :  { %v1722_v26 = vmul.f32 0.5, %v3020_v16  ;;  %v2892_v16 = vld [vmem:[%s4291_s7 + $0x20] sm:$0xff]  ;;  %v1581_v38 = vadd.f32 %v4173_v46, %v1580_v18 }
 0x224   :  { %3021 = vtanh.f32 %v1691_v58  ;;  %2020 = vmatpush.bf16.msrb.mxu1 %v2892_v16 }
 0x225   :  { %v1738_v55 = vadd.f32 0.5, %v1722_v26 }
 0x226   :  { %v1619_v33 = vpop.f32.mrf.mxu2 }
 0x227   :  { %v1658_v54 = vpop.f32.mrf.mxu3  ;;  %v1620_v53 = vadd.f32 %v1619_v33, %v1571_v48 }
 0x228   :  { %v1659_v51 = vadd.f32 %v1658_v54, %v1610_v21  ;;  %2021 = vmatpush.bf16.msrb.mxu1 %v2891_v41 }
 0x22a   :  { %v3022_v60 = vpop.eup %3021  ;;  %v1692_v20 = vmul.f32 0.5, %v1659_v51  ;;  %v1582_v33 = vpop.f32.mrf.mxu1 }
 0x22b   :  { %v1723_v14 = vmul.f32 0.5, %v3022_v60 }
 0x22c   :  { %3023 = vtanh.f32 %v1692_v20 }
 0x22d   :  { %v1739_v9 = vadd.f32 0.5, %v1723_v14 }
 0x22e   :  { %v1621_v62 = vpop.f32.mrf.mxu2 }
 0x22f   :  { %v1660_v29 = vpop.f32.mrf.mxu3  ;;  %v1753_v2 = vpack.c.bf16 %v1739_v9, %v1738_v55  ;;  %v1622_v7 = vadd.f32 %v1621_v62, %v1573_v35 }
 0x230   :  { %v1661_v8 = vadd.f32 %v1660_v29, %v1612_v31 }
 0x231   :  { %1841 = vmatmul.bf16.gmra.mxu0 %v1753_v2 }
 0x232   :  { %v1693_v4 = vmul.f32 0.5, %v1661_v8  ;;  %v3024_v43 = vpop.eup %3023 }
 0x233   :  { %v1724_v61 = vmul.f32 0.5, %v3024_v43 }
 0x234   :  { %3025 = vtanh.f32 %v1693_v4 }
 0x235   :  { %v1740_v34 = vadd.f32 0.5, %v1724_v61 }
 0x236   :  { %v1624_v24 = vpop.f32.mrf.mxu2 }
 0x237   :  { %v1663_v45 = vpop.f32.mrf.mxu3  ;;  %v1625_v54 = vadd.f32 %v1624_v24, %v1576_v52 }
 0x238   :  { %v1664_v22 = vadd.f32 %v1663_v45, %v1615_v50 }
 0x23a   :  { %v3026_v47 = vpop.eup %3025  ;;  %v1694_v3 = vmul.f32 0.5, %v1664_v22 }
 0x23b   :  { %v1725_v32 = vmul.f32 0.5, %v3026_v47 }
 0x23c   :  { %3027 = vtanh.f32 %v1694_v3  ;;  %v1583_v3 = vadd.f32 %v4173_v46, %v1582_v33 }
 0x23d   :  { %v1741_v63 = vadd.f32 0.5, %v1725_v32 }
 0x23e   :  { %v1626_v40 = vpop.f32.mrf.mxu2 }
 0x23f   :  { %v1665_v37 = vpop.f32.mrf.mxu3  ;;  %v1754_v30 = vpack.c.bf16 %v1741_v63, %v1740_v34  ;;  %v1627_v29 = vadd.f32 %v1626_v40, %v1578_v6 }
 0x240   :  { %v1666_v42 = vadd.f32 %v1665_v37, %v1617_v1  ;;  %v2890_v1 = vld [vmem:[%s4291_s7 + $0x10] sm:$0xff]  ;;  %v1585_v37 = vpop.f32.mrf.mxu1 }
 0x241   :  { %1846 = vmatmul.bf16.gmra.mxu0 %v1754_v30  ;;  %2022 = vmatpush.bf16.msrb.mxu1 %v2890_v1 }
 0x242   :  { %v1695_v36 = vmul.f32 0.5, %v1666_v42  ;;  %v3028_v11 = vpop.eup %3027 }
 0x243   :  { %v1726_v44 = vmul.f32 0.5, %v3028_v11 }
 0x244   :  { %3029 = vtanh.f32 %v1695_v36 }
 0x245   :  { %v1742_v23 = vadd.f32 0.5, %v1726_v44  ;;  %2023 = vmatpush.bf16.msrb.mxu1 %v2889_v59 }
 0x246   :  { %v1629_v55 = vpop.f32.mrf.mxu2 }
 0x247   :  { %v1668_v17 = vpop.f32.mrf.mxu3  ;;  %v1630_v50 = vadd.f32 %v1629_v55, %v1581_v38 }
 0x248   :  { %v1669_v27 = vadd.f32 %v1668_v17, %v1620_v53  ;;  %v1586_v53 = vadd.f32 %v4173_v46, %v1585_v37  ;;  %v1587_v44 = vpop.f32.mrf.mxu1 }
 0x24a   :  { %v3030_v19 = vpop.eup %3029  ;;  %v1696_v10 = vmul.f32 0.5, %v1669_v27 }
 0x24b   :  { %v1727_v28 = vmul.f32 0.5, %v3030_v19 }
 0x24c   :  { %3031 = vtanh.f32 %v1696_v10 }
 0x24d   :  { %v1743_v13 = vadd.f32 0.5, %v1727_v28 }
 0x24e   :  { %v1631_v45 = vpop.f32.mrf.mxu2 }
 0x24f   :  { %v1670_v49 = vpop.f32.mrf.mxu3  ;;  %v1755_v12 = vpack.c.bf16 %v1743_v13, %v1742_v23  ;;  %v1632_v62 = vadd.f32 %v1631_v45, %v1583_v3  ;;  %v1588_v23 = vadd.f32 %v4173_v46, %v1587_v44  ;;  %v2888_v46 = vld [vmem:[%s4291_s7] sm:$0xff] }
 0x250   :  { %v1671_v25 = vadd.f32 %v1670_v49, %v1622_v7  ;;  %2024 = vmatpush.bf16.msrb.mxu1 %v2888_v46 }
 0x251   :  { %1851 = vmatmul.bf16.gmra.mxu0 %v1755_v12 }
 0x252   :  { %v1697_v58 = vmul.f32 0.5, %v1671_v25  ;;  %v3032_v21 = vpop.eup %3031 }
 0x253   :  { %v1728_v26 = vmul.f32 0.5, %v3032_v21 }
 0x254   :  { %3033 = vtanh.f32 %v1697_v58 }
 0x255   :  { %v1744_v9 = vadd.f32 0.5, %v1728_v26 }
 0x256   :  { %v1634_v48 = vpop.f32.mrf.mxu2 }
 0x257   :  { %v1673_v51 = vpop.f32.mrf.mxu3  ;;  %v1635_v17 = vadd.f32 %v1634_v48, %v1586_v53 }
 0x258   :  { %v1674_v56 = vadd.f32 %v1673_v51, %v1625_v54 }
 0x25a   :  { %v3034_v60 = vpop.eup %3033  ;;  %v1698_v20 = vmul.f32 0.5, %v1674_v56 }
 0x25b   :  { %v1729_v14 = vmul.f32 0.5, %v3034_v60  ;;  %v4218_v60 = vld [vmem:[%s4290_s6] ss:$0 sm:$0xff] }
 0x25c   :  { %3035 = vtanh.f32 %v1698_v20 }
 0x25d   :  { %v1745_v31 = vadd.f32 0.5, %v1729_v14 }
 0x25e   :  { %v1636_v35 = vpop.f32.mrf.mxu2 }
 0x25f   :  { %v1675_v2 = vpop.f32.mrf.mxu3  ;;  %v1756_v8 = vpack.c.bf16 %v1745_v31, %v1744_v9  ;;  %v1637_v12 = vadd.f32 %v1636_v35, %v1588_v23 }
 0x260   :  { %v1676_v4 = vadd.f32 %v1675_v2, %v1627_v29 }
 0x261   :  { %1856 = vmatmul.bf16.gmra.mxu0 %v1756_v8 }
 0x262   :  { %v1699_v15 = vmul.f32 0.5, %v1676_v4  ;;  %v3036_v43 = vpop.eup %3035 }
 0x263   :  { %v1730_v47 = vmul.f32 0.5, %v3036_v43 }
 0x264   :  { %3037 = vtanh.f32 %v1699_v15 }
 0x265   :  { %v1746_v34 = vadd.f32 0.5, %v1730_v47 }
 0x267   :  { %v1678_v22 = vpop.f32.mrf.mxu3 }
 0x268   :  { %v1679_v61 = vadd.f32 %v1678_v22, %v1630_v50 }
 0x26a   :  { %v3038_v32 = vpop.eup %3037  ;;  %v1700_v39 = vmul.f32 0.5, %v1679_v61 }
 0x26b   :  { %v1731_v5 = vmul.f32 0.5, %v3038_v32 }
 0x26c   :  { %3039 = vtanh.f32 %v1700_v39 }
 0x26d   :  { %v1747_v63 = vadd.f32 0.5, %v1731_v5 }
 0x26f   :  { %v1680_v30 = vpop.f32.mrf.mxu3  ;;  %v1757_v42 = vpack.c.bf16 %v1747_v63, %v1746_v34 }
 0x270   :  { %v1681_v36 = vadd.f32 %v1680_v30, %v1632_v62 }
 0x271   :  { %1861 = vmatmul.bf16.gmra.mxu0 %v1757_v42 }
 0x272   :  { %v1701_v11 = vmul.f32 0.5, %v1681_v36  ;;  %v3040_v57 = vpop.eup %3039 }
 0x273   :  { %v1732_v19 = vmul.f32 0.5, %v3040_v57 }
 0x274   :  { %3041 = vtanh.f32 %v1701_v11 }
 0x275   :  { %v1748_v7 = vadd.f32 0.5, %v1732_v19 }
 0x277   :  { %v1683_v27 = vpop.f32.mrf.mxu3 }
 0x278   :  { %v1684_v24 = vadd.f32 %v1683_v27, %v1635_v17 }
 0x27a   :  { %v3042_v28 = vpop.eup %3041  ;;  %v1702_v13 = vmul.f32 0.5, %v1684_v24 }
 0x27b   :  { %v1733_v10 = vmul.f32 0.5, %v3042_v28 }
 0x27c   :  { %3043 = vtanh.f32 %v1702_v13 }
 0x27d   :  { %v1749_v49 = vadd.f32 0.5, %v1733_v10 }
 0x27f   :  { %v1685_v25 = vpop.f32.mrf.mxu3  ;;  %v1758_v0 = vpack.c.bf16 %v1749_v49, %v1748_v7 }
 0x280   :  { %v1686_v58 = vadd.f32 %v1685_v25, %v1637_v12 }
 0x281   :  { %1866 = vmatmul.bf16.gmra.mxu0 %v1758_v0 }
 0x282   :  { %v1703_v40 = vmul.f32 0.5, %v1686_v58  ;;  %v3044_v52 = vpop.eup %3043 }
 0x283   :  { %v1734_v16 = vmul.f32 0.5, %v3044_v52 }
 0x284   :  { %3045 = vtanh.f32 %v1703_v40 }
 0x285   :  { %v1750_v51 = vadd.f32 0.5, %v1734_v16 }
 0x28a   :  { %v3046_v21 = vpop.eup %3045 }
 0x28b   :  { %v1735_v54 = vmul.f32 0.5, %v3046_v21 }
 0x28d   :  { %v1751_v56 = vadd.f32 0.5, %v1735_v54 }
 0x28f   :  { %v1759_v26 = vpack.c.bf16 %v1751_v56, %v1750_v51 }
 0x291   :  { %1871 = vmatmul.bf16.gmra.mxu0 %v1759_v26 }
 0x29e   :  { %v1837_v18 = vpop.f32.mrf.mxu0 }
 0x29f   :  { %v1838_v14 = vadd.f32 %v4218_v60, %v1837_v18 }
 0x2a1   :  { %v1877_v6 = vmul.f32 0.5, %v1838_v14 }
 0x2a3   :  { %3047 = vtanh.f32 %v1877_v6 }
 0x2a6   :  { %v1839_v20 = vpop.f32.mrf.mxu0 }
 0x2a7   :  { %v1840_v55 = vadd.f32 %v4218_v60, %v1839_v20 }
 0x2a9   :  { %v1878_v9 = vmul.f32 0.5, %v1840_v55  ;;  %v3048_v31 = vpop.eup %3047 }
 0x2aa   :  { %v1909_v8 = vmul.f32 0.5, %v3048_v31 }
 0x2ab   :  { %3049 = vtanh.f32 %v1878_v9 }
 0x2ac   :  { %v1925_v33 = vadd.f32 0.5, %v1909_v8 }
 0x2ae   :  { %v1842_v29 = vpop.f32.mrf.mxu0 }
 0x2af   :  { %v1843_v2 = vadd.f32 %v4218_v60, %v1842_v29 }
 0x2b1   :  { %v3050_v4 = vpop.eup %3049  ;;  %v1879_v38 = vmul.f32 0.5, %v1843_v2 }
 0x2b2   :  { %v1910_v15 = vmul.f32 0.5, %v3050_v4 }
 0x2b3   :  { %3051 = vtanh.f32 %v1879_v38 }
 0x2b4   :  { %v1926_v41 = vadd.f32 0.5, %v1910_v15 }
 0x2b6   :  { %v1941_v43 = vpack.c.bf16 %v1926_v41, %v1925_v33  ;;  %v1844_v50 = vpop.f32.mrf.mxu0 }
 0x2b7   :  { %v1845_v45 = vadd.f32 %v4218_v60, %v1844_v50 }
 0x2b8   :  { %2025 = vmatmul.bf16.vlgmr.msrb.gmra.mxu1 %v1941_v43 }
 0x2b9   :  { %v1880_v22 = vmul.f32 0.5, %v1845_v45  ;;  %v3052_v61 = vpop.eup %3051 }
 0x2ba   :  { %v1911_v5 = vmul.f32 0.5, %v3052_v61 }
 0x2bb   :  { %3053 = vtanh.f32 %v1880_v22 }
 0x2bc   :  { %v1927_v63 = vadd.f32 0.5, %v1911_v5 }
 0x2be   :  { %v1847_v47 = vpop.f32.mrf.mxu0 }
 0x2bf   :  { %v1848_v32 = vadd.f32 %v4218_v60, %v1847_v47 }
 0x2c1   :  { %v3054_v3 = vpop.eup %3053  ;;  %v1881_v34 = vmul.f32 0.5, %v1848_v32 }
 0x2c2   :  { %v1912_v39 = vmul.f32 0.5, %v3054_v3 }
 0x2c3   :  { %3055 = vtanh.f32 %v1881_v34 }
 0x2c4   :  { %v1928_v1 = vadd.f32 0.5, %v1912_v39 }
 0x2c6   :  { %v1849_v62 = vpop.f32.mrf.mxu0  ;;  %v1942_v37 = vpack.c.bf16 %v1928_v1, %v1927_v63 }
 0x2c7   :  { %v1850_v30 = vadd.f32 %v4218_v60, %v1849_v62 }
 0x2c8   :  { %2030 = vmatmul.bf16.gmra.mxu1 %v1942_v37 }
 0x2c9   :  { %v1882_v42 = vmul.f32 0.5, %v1850_v30  ;;  %v3056_v36 = vpop.eup %3055 }
 0x2ca   :  { %v1913_v11 = vmul.f32 0.5, %v3056_v36 }
 0x2cb   :  { %3057 = vtanh.f32 %v1882_v42 }
 0x2cc   :  { %v1929_v27 = vadd.f32 0.5, %v1913_v11 }
 0x2ce   :  { %v1852_v48 = vpop.f32.mrf.mxu0 }
 0x2cf   :  { %v1853_v59 = vadd.f32 %v4218_v60, %v1852_v48 }
 0x2d1   :  { %v3058_v53 = vpop.eup %3057  ;;  %v1883_v17 = vmul.f32 0.5, %v1853_v59 }
 0x2d2   :  { %v1914_v57 = vmul.f32 0.5, %v3058_v53 }
 0x2d3   :  { %3059 = vtanh.f32 %v1883_v17 }
 0x2d4   :  { %v1930_v24 = vadd.f32 0.5, %v1914_v57 }
 0x2d6   :  { %v1854_v44 = vpop.f32.mrf.mxu0  ;;  %v1943_v19 = vpack.c.bf16 %v1930_v24, %v1929_v27 }
 0x2d7   :  { %v1855_v28 = vadd.f32 %v4218_v60, %v1854_v44  ;;  %v4239_v44 = vld [vmem:[%s4292_s8] ss:$0 sm:$0xff] }
 0x2d8   :  { %2035 = vmatmul.bf16.gmra.mxu1 %v1943_v19 }
 0x2d9   :  { %v1884_v35 = vmul.f32 0.5, %v1855_v28  ;;  %v3060_v10 = vpop.eup %3059 }
 0x2da   :  { %v1915_v7 = vmul.f32 0.5, %v3060_v10 }
 0x2db   :  { %3061 = vtanh.f32 %v1884_v35 }
 0x2dc   :  { %v1931_v0 = vadd.f32 0.5, %v1915_v7 }
 0x2de   :  { %v1857_v23 = vpop.f32.mrf.mxu0 }
 0x2df   :  { %v1858_v13 = vadd.f32 %v4218_v60, %v1857_v23 }
 0x2e1   :  { %v3062_v49 = vpop.eup %3061  ;;  %v1885_v25 = vmul.f32 0.5, %v1858_v13 }
 0x2e2   :  { %v1916_v12 = vmul.f32 0.5, %v3062_v49  ;;  %v4246_v49 = vld [vmem:[%s4293_s9] ss:$0 sm:$0xff] }
 0x2e3   :  { %3063 = vtanh.f32 %v1885_v25 }
 0x2e4   :  { %v1932_v58 = vadd.f32 0.5, %v1916_v12 }
 0x2e6   :  { %v1859_v40 = vpop.f32.mrf.mxu0  ;;  %v1944_v52 = vpack.c.bf16 %v1932_v58, %v1931_v0 }
 0x2e7   :  { %v1860_v16 = vadd.f32 %v4218_v60, %v1859_v40 }
 0x2e8   :  { %2040 = vmatmul.bf16.gmra.mxu1 %v1944_v52 }
 0x2e9   :  { %v1886_v21 = vmul.f32 0.5, %v1860_v16  ;;  %v3064_v54 = vpop.eup %3063 }
 0x2ea   :  { %v1917_v26 = vmul.f32 0.5, %v3064_v54 }
 0x2eb   :  { %3065 = vtanh.f32 %v1886_v21 }
 0x2ec   :  { %v1933_v6 = vadd.f32 0.5, %v1917_v26 }
 0x2ee   :  { %v1862_v51 = vpop.f32.mrf.mxu0 }
 0x2ef   :  { %v1863_v56 = vadd.f32 %v4218_v60, %v1862_v51 }
 0x2f1   :  { %v3066_v46 = vpop.eup %3065  ;;  %v1887_v14 = vmul.f32 0.5, %v1863_v56 }
 0x2f2   :  { %v1918_v18 = vmul.f32 0.5, %v3066_v46 }
 0x2f3   :  { %3067 = vtanh.f32 %v1887_v14 }
 0x2f4   :  { %v1934_v20 = vadd.f32 0.5, %v1918_v18 }
 0x2f6   :  { %v1864_v55 = vpop.f32.mrf.mxu0  ;;  %v1945_v9 = vpack.c.bf16 %v1934_v20, %v1933_v6 }
 0x2f7   :  { %v1865_v31 = vadd.f32 %v4218_v60, %v1864_v55 }
 0x2f8   :  { %2045 = vmatmul.bf16.gmra.mxu1 %v1945_v9 }
 0x2f9   :  { %v1888_v29 = vmul.f32 0.5, %v1865_v31  ;;  %v3068_v2 = vpop.eup %3067 }
 0x2fa   :  { %v1919_v15 = vmul.f32 0.5, %v3068_v2 }
 0x2fb   :  { %3069 = vtanh.f32 %v1888_v29 }
 0x2fc   :  { %v1935_v43 = vadd.f32 0.5, %v1919_v15 }
 0x2fe   :  { %v1867_v8 = vpop.f32.mrf.mxu0 }
 0x2ff   :  { %v1868_v4 = vadd.f32 %v4218_v60, %v1867_v8 }
 0x301   :  { %v3070_v38 = vpop.eup %3069  ;;  %v1889_v41 = vmul.f32 0.5, %v1868_v4 }
 0x302   :  { %v1920_v33 = vmul.f32 0.5, %v3070_v38 }
 0x303   :  { %3071 = vtanh.f32 %v1889_v41 }
 0x304   :  { %v1936_v50 = vadd.f32 0.5, %v1920_v33 }
 0x306   :  { %v1869_v45 = vpop.f32.mrf.mxu0  ;;  %v1946_v22 = vpack.c.bf16 %v1936_v50, %v1935_v43 }
 0x307   :  { %v1870_v61 = vadd.f32 %v4218_v60, %v1869_v45 }
 0x308   :  { %2050 = vmatmul.bf16.gmra.mxu1 %v1946_v22 }
 0x309   :  { %v1890_v47 = vmul.f32 0.5, %v1870_v61  ;;  %v3072_v32 = vpop.eup %3071 }
 0x30a   :  { %v1921_v39 = vmul.f32 0.5, %v3072_v32 }
 0x30b   :  { %3073 = vtanh.f32 %v1890_v47 }
 0x30c   :  { %v1937_v62 = vadd.f32 0.5, %v1921_v39 }
 0x30e   :  { %v1872_v5 = vpop.f32.mrf.mxu0 }
 0x30f   :  { %v1873_v3 = vadd.f32 %v4218_v60, %v1872_v5 }
 0x311   :  { %v3074_v34 = vpop.eup %3073  ;;  %v1891_v1 = vmul.f32 0.5, %v1873_v3 }
 0x312   :  { %v1922_v63 = vmul.f32 0.5, %v3074_v34 }
 0x313   :  { %3075 = vtanh.f32 %v1891_v1 }
 0x314   :  { %v1938_v37 = vadd.f32 0.5, %v1922_v63 }
 0x316   :  { %v1874_v30 = vpop.f32.mrf.mxu0  ;;  %v1947_v42 = vpack.c.bf16 %v1938_v37, %v1937_v62 }
 0x317   :  { %v1875_v36 = vadd.f32 %v4218_v60, %v1874_v30 }
 0x318   :  { %2055 = vmatmul.bf16.gmra.mxu1 %v1947_v42 }
 0x319   :  { %v1892_v48 = vmul.f32 0.5, %v1875_v36  ;;  %v3076_v59 = vpop.eup %3075 }
 0x31a   :  { %v1923_v11 = vmul.f32 0.5, %v3076_v59 }
 0x31b   :  { %3077 = vtanh.f32 %v1892_v48 }
 0x31c   :  { %v1939_v17 = vadd.f32 0.5, %v1923_v11 }
 0x321   :  { %v3078_v53 = vpop.eup %3077 }
 0x322   :  { %v1924_v57 = vmul.f32 0.5, %v3078_v53 }
 0x324   :  { %v1940_v27 = vadd.f32 0.5, %v1924_v57 }
 0x326   :  { %v1948_v24 = vpack.c.bf16 %v1940_v27, %v1939_v17 }
 0x328   :  { %2060 = vmatmul.bf16.gmra.mxu1 %v1948_v24 }
 0x335   :  { %v2026_v19 = vpop.f32.mrf.mxu1 }
 0x336   :  { %v2027_v28 = vadd.f32 %v4239_v44, %v2026_v19 }
 0x338   :  { %v2066_v60 = vmul.f32 0.5, %v2027_v28 }
 0x33a   :  { %3079 = vtanh.f32 %v2066_v60 }
 0x33d   :  { %v2028_v35 = vpop.f32.mrf.mxu1 }
 0x33e   :  { %v2029_v10 = vadd.f32 %v4239_v44, %v2028_v35 }
 0x340   :  { %v3080_v23 = vpop.eup %3079  ;;  %v2067_v13 = vmul.f32 0.5, %v2029_v10 }
 0x341   :  { %v2098_v7 = vmul.f32 0.5, %v3080_v23 }
 0x342   :  { %3081 = vtanh.f32 %v2067_v13 }
 0x343   :  { %v2114_v12 = vadd.f32 0.5, %v2098_v7 }
 0x345   :  { %v2031_v25 = vpop.f32.mrf.mxu1  ;;  %v2134_v0 = vmul.f32 %v4246_v49, %v2114_v12 }
 0x346   :  { %v2032_v58 = vadd.f32 %v4239_v44, %v2031_v25 }
 0x347   :  { %2150 = vxpose.xlu0.b32.start [1/16] %v2134_v0, 128 }
 0x348   :  { %v3082_v40 = vpop.eup %3081  ;;  %v2068_v52 = vmul.f32 0.5, %v2032_v58 }
 0x349   :  { %v2099_v16 = vmul.f32 0.5, %v3082_v40 }
 0x34a   :  { %3083 = vtanh.f32 %v2068_v52 }
 0x34b   :  { %v2115_v21 = vadd.f32 0.5, %v2099_v16 }
 0x34d   :  { %v2033_v54 = vpop.f32.mrf.mxu1  ;;  %v2135_v51 = vmul.f32 %v4246_v49, %v2115_v21 }
 0x34e   :  { %v2034_v56 = vadd.f32 %v4239_v44, %v2033_v54 }
 0x34f   :  { %2151 = vxpose.xlu0.b32.cont [2/16] %v2135_v51, 128 }
 0x350   :  { %v3084_v26 = vpop.eup %3083  ;;  %v2069_v46 = vmul.f32 0.5, %v2034_v56 }
 0x351   :  { %v2100_v18 = vmul.f32 0.5, %v3084_v26 }
 0x352   :  { %3085 = vtanh.f32 %v2069_v46 }
 0x353   :  { %v2116_v14 = vadd.f32 0.5, %v2100_v18 }
 0x355   :  { %v2036_v6 = vpop.f32.mrf.mxu1  ;;  %v2136_v20 = vmul.f32 %v4246_v49, %v2116_v14 }
 0x356   :  { %v2037_v55 = vadd.f32 %v4239_v44, %v2036_v6 }
 0x357   :  { %2152 = vxpose.xlu0.b32.cont [3/16] %v2136_v20, 128 }
 0x358   :  { %v3086_v9 = vpop.eup %3085  ;;  %v2070_v31 = vmul.f32 0.5, %v2037_v55 }
 0x359   :  { %v2101_v29 = vmul.f32 0.5, %v3086_v9 }
 0x35a   :  { %3087 = vtanh.f32 %v2070_v31 }
 0x35b   :  { %v2117_v2 = vadd.f32 0.5, %v2101_v29 }
 0x35d   :  { %v2038_v8 = vpop.f32.mrf.mxu1  ;;  %v2137_v4 = vmul.f32 %v4246_v49, %v2117_v2 }
 0x35e   :  { %v2039_v15 = vadd.f32 %v4239_v44, %v2038_v8 }
 0x35f   :  { %2153 = vxpose.xlu0.b32.cont [4/16] %v2137_v4, 128 }
 0x360   :  { %v3088_v38 = vpop.eup %3087  ;;  %v2071_v33 = vmul.f32 0.5, %v2039_v15 }
 0x361   :  { %v2102_v41 = vmul.f32 0.5, %v3088_v38 }
 0x362   :  { %3089 = vtanh.f32 %v2071_v33 }
 0x363   :  { %v2118_v43 = vadd.f32 0.5, %v2102_v41 }
 0x365   :  { %v2041_v50 = vpop.f32.mrf.mxu1  ;;  %v2138_v45 = vmul.f32 %v4246_v49, %v2118_v43 }
 0x366   :  { %v2042_v22 = vadd.f32 %v4239_v44, %v2041_v50 }
 0x367   :  { %2154 = vxpose.xlu0.b32.cont [5/16] %v2138_v45, 128 }
 0x368   :  { %v3090_v61 = vpop.eup %3089  ;;  %v2072_v47 = vmul.f32 0.5, %v2042_v22 }
 0x369   :  { %v2103_v32 = vmul.f32 0.5, %v3090_v61 }
 0x36a   :  { %3091 = vtanh.f32 %v2072_v47 }
 0x36b   :  { %v2119_v5 = vadd.f32 0.5, %v2103_v32 }
 0x36d   :  { %v2043_v3 = vpop.f32.mrf.mxu1  ;;  %v2139_v39 = vmul.f32 %v4246_v49, %v2119_v5 }
 0x36e   :  { %v2044_v34 = vadd.f32 %v4239_v44, %v2043_v3 }
 0x36f   :  { %2155 = vxpose.xlu0.b32.cont [6/16] %v2139_v39, 128 }
 0x370   :  { %v3092_v63 = vpop.eup %3091  ;;  %v2073_v1 = vmul.f32 0.5, %v2044_v34 }
 0x371   :  { %v2104_v62 = vmul.f32 0.5, %v3092_v63 }
 0x372   :  { %3093 = vtanh.f32 %v2073_v1 }
 0x373   :  { %v2120_v37 = vadd.f32 0.5, %v2104_v62 }
 0x375   :  { %v2046_v30 = vpop.f32.mrf.mxu1  ;;  %v2140_v42 = vmul.f32 %v4246_v49, %v2120_v37  ;;  %v16_v37 = vstv %s4294_s10 }
 0x376   :  { %v2047_v36 = vadd.f32 %v4239_v44, %v2046_v30  ;;  %17 = vst [vmem:[#allocation2] sm:$0x1] %v16_v37 }
 0x377   :  { %2156 = vxpose.xlu0.b32.cont [7/16] %v2140_v42, 128 }
 0x378   :  { %v3094_v48 = vpop.eup %3093  ;;  %v2074_v59 = vmul.f32 0.5, %v2047_v36 }
 0x379   :  { %v2105_v11 = vmul.f32 0.5, %v3094_v48 }
 0x37a   :  { %3095 = vtanh.f32 %v2074_v59 }
 0x37b   :  { %v2121_v53 = vadd.f32 0.5, %v2105_v11 }
 0x37d   :  { %v2048_v57 = vpop.f32.mrf.mxu1  ;;  %v2141_v17 = vmul.f32 %v4246_v49, %v2121_v53  ;;  %v2203_v30 = vld [vmem:[#allocation2] sm:$0x1] }
 0x37e   :  { %v2049_v27 = vadd.f32 %v4239_v44, %v2048_v57 }
 0x37f   :  { %2157 = vxpose.xlu0.b32.cont [8/16] %v2141_v17, 128 }
 0x380   :  { %v3096_v24 = vpop.eup %3095  ;;  %v2075_v19 = vmul.f32 0.5, %v2049_v27 }
 0x381   :  { %v2106_v28 = vmul.f32 0.5, %v3096_v24 }
 0x382   :  { %3097 = vtanh.f32 %v2075_v19 }
 0x383   :  { %v2122_v60 = vadd.f32 0.5, %v2106_v28 }
 0x385   :  { %v2051_v35 = vpop.f32.mrf.mxu1  ;;  %v2142_v10 = vmul.f32 %v4246_v49, %v2122_v60 }
 0x386   :  { %v2052_v23 = vadd.f32 %v4239_v44, %v2051_v35 }
 0x387   :  { %2158 = vxpose.xlu0.b32.cont [9/16] %v2142_v10, 128 }
 0x388   :  { %v3098_v13 = vpop.eup %3097  ;;  %v2076_v7 = vmul.f32 0.5, %v2052_v23 }
 0x389   :  { %v2107_v12 = vmul.f32 0.5, %v3098_v13 }
 0x38a   :  { %3099 = vtanh.f32 %v2076_v7 }
 0x38b   :  { %v2123_v25 = vadd.f32 0.5, %v2107_v12 }
 0x38d   :  { %v2053_v0 = vpop.f32.mrf.mxu1  ;;  %v2143_v58 = vmul.f32 %v4246_v49, %v2123_v25 }
 0x38e   :  { %v2054_v40 = vadd.f32 %v4239_v44, %v2053_v0 }
 0x38f   :  { %2159 = vxpose.xlu0.b32.cont [10/16] %v2143_v58, 128 }
 0x390   :  { %v3100_v52 = vpop.eup %3099  ;;  %v2077_v16 = vmul.f32 0.5, %v2054_v40 }
 0x391   :  { %v2108_v21 = vmul.f32 0.5, %v3100_v52 }
 0x392   :  { %3101 = vtanh.f32 %v2077_v16 }
 0x393   :  { %v2124_v54 = vadd.f32 0.5, %v2108_v21 }
 0x395   :  { %v2056_v51 = vpop.f32.mrf.mxu1  ;;  %v2144_v56 = vmul.f32 %v4246_v49, %v2124_v54 }
 0x396   :  { %v2057_v26 = vadd.f32 %v4239_v44, %v2056_v51 }
 0x397   :  { %2160 = vxpose.xlu0.b32.cont [11/16] %v2144_v56, 128 }
 0x398   :  { %v3102_v46 = vpop.eup %3101  ;;  %v2078_v18 = vmul.f32 0.5, %v2057_v26 }
 0x399   :  { %v2109_v14 = vmul.f32 0.5, %v3102_v46 }
 0x39a   :  { %3103 = vtanh.f32 %v2078_v18 }
 0x39b   :  { %v2125_v6 = vadd.f32 0.5, %v2109_v14 }
 0x39d   :  { %v2058_v20 = vpop.f32.mrf.mxu1  ;;  %v2145_v55 = vmul.f32 %v4246_v49, %v2125_v6 }
 0x39e   :  { %v2059_v9 = vadd.f32 %v4239_v44, %v2058_v20 }
 0x39f   :  { %2161 = vxpose.xlu0.b32.cont [12/16] %v2145_v55, 128 }
 0x3a0   :  { %v3104_v31 = vpop.eup %3103  ;;  %v2079_v29 = vmul.f32 0.5, %v2059_v9 }
 0x3a1   :  { %v2110_v2 = vmul.f32 0.5, %v3104_v31 }
 0x3a2   :  { %3105 = vtanh.f32 %v2079_v29 }
 0x3a3   :  { %v2126_v8 = vadd.f32 0.5, %v2110_v2 }
 0x3a5   :  { %v2061_v4 = vpop.f32.mrf.mxu1  ;;  %v2146_v15 = vmul.f32 %v4246_v49, %v2126_v8 }
 0x3a6   :  { %v2062_v38 = vadd.f32 %v4239_v44, %v2061_v4 }
 0x3a7   :  { %2162 = vxpose.xlu0.b32.cont [13/16] %v2146_v15, 128 }
 0x3a8   :  { %v3106_v33 = vpop.eup %3105  ;;  %v2080_v41 = vmul.f32 0.5, %v2062_v38 }
 0x3a9   :  { %v2111_v43 = vmul.f32 0.5, %v3106_v33 }
 0x3aa   :  { %3107 = vtanh.f32 %v2080_v41 }
 0x3ab   :  { %v2127_v50 = vadd.f32 0.5, %v2111_v43 }
 0x3ad   :  { %v2063_v45 = vpop.f32.mrf.mxu1  ;;  %v2147_v22 = vmul.f32 %v4246_v49, %v2127_v50 }
 0x3ae   :  { %v2064_v61 = vadd.f32 %v4239_v44, %v2063_v45  ;;  %v3111_v44 = vmov 0  }
 0x3af   :  { %2163 = vxpose.xlu0.b32.cont [14/16] %v2147_v22, 128  ;;  %2913 = vset.pattern.permute.xlu1 %v3111_v44 }
 0x3b0   :  { %v3108_v47 = vpop.eup %3107  ;;  %v2081_v32 = vmul.f32 0.5, %v2064_v61  ;;  %2206 = vperm.xlu1 %2913, %v2203_v30  }
 0x3b1   :  { %v2112_v5 = vmul.f32 0.5, %v3108_v47 }
 0x3b2   :  { %3109 = vtanh.f32 %v2081_v32 }
 0x3b3   :  { %v2128_v3 = vadd.f32 0.5, %v2112_v5 }
 0x3b5   :  { %v2148_v39 = vmul.f32 %v4246_v49, %v2128_v3 }
 0x3b7   :  { %2164 = vxpose.xlu0.b32.cont [15/16] %v2148_v39, 128 }
 0x3b8   :  { %v3110_v34 = vpop.eup %3109 }
 0x3b9   :  { %v2113_v63 = vmul.f32 0.5, %v3110_v34 }
 0x3bb   :  { %v2129_v1 = vadd.f32 0.5, %v2113_v63 }
 0x3bd   :  { %v2149_v62 = vmul.f32 %v4246_v49, %v2129_v1 }
 0x3bf   :  { %2165 = vxpose.xlu0.b32.end [16/16] %v2149_v62, 128 }
 0x3eb   :  { %v2166_v42 = vpop.trf.xlu0 }
 0x3f3   :  { %v2167_v36 = vpop.trf.xlu0 }
 0x3f4   :  { %v2182_v48 = vadd.f32 %v2167_v36, %v2166_v42 }
 0x3fb   :  { %v2168_v59 = vpop.trf.xlu0 }
 0x3fc   :  { %v2183_v11 = vadd.f32 %v2182_v48, %v2168_v59 }
 0x403   :  { %v2169_v53 = vpop.trf.xlu0 }
 0x404   :  { %v2184_v57 = vadd.f32 %v2183_v11, %v2169_v53 }
 0x40b   :  { %v2170_v17 = vpop.trf.xlu0 }
 0x40c   :  { %v2185_v27 = vadd.f32 %v2184_v57, %v2170_v17 }
 0x413   :  { %v2171_v49 = vpop.trf.xlu0 }
 0x414   :  { %v2186_v13 = vadd.f32 %v2185_v27, %v2171_v49 }
 0x41b   :  { %v2172_v24 = vpop.trf.xlu0 }
 0x41c   :  { %v2187_v7 = vadd.f32 %v2186_v13, %v2172_v24 }
 0x422   :  { %v2207_v6 = vpop.permute.xlu1 %2206 }
 0x423   :  { %v2173_v19 = vpop.trf.xlu0  ;;  %v2209_v9 = vperm.slane %v2207_v6, 0 }
 0x424   :  { %v2188_v25 = vadd.f32 %v2187_v7, %v2173_v19 }
 0x426   :  { %2914 = vset.pattern.permute.xlu0 %v3111_v44 }
 0x42b   :  { %v2174_v28 = vpop.trf.xlu0 }
 0x42c   :  { %v2189_v0 = vadd.f32 %v2188_v25, %v2174_v28 }
 0x433   :  { %v2175_v60 = vpop.trf.xlu0 }
 0x434   :  { %v2190_v58 = vadd.f32 %v2189_v0, %v2175_v60 }
 0x43b   :  { %v2176_v35 = vpop.trf.xlu0 }
 0x43c   :  { %v2191_v40 = vadd.f32 %v2190_v58, %v2176_v35 }
 0x443   :  { %v2177_v10 = vpop.trf.xlu0 }
 0x444   :  { %v2192_v16 = vadd.f32 %v2191_v40, %v2177_v10 }
 0x44b   :  { %v2178_v23 = vpop.trf.xlu0 }
 0x44c   :  { %v2193_v21 = vadd.f32 %v2192_v16, %v2178_v23 }
 0x453   :  { %v2179_v12 = vpop.trf.xlu0 }
 0x454   :  { %v2194_v54 = vadd.f32 %v2193_v21, %v2179_v12 }
 0x45b   :  { %v2180_v52 = vpop.trf.xlu0 }
 0x45c   :  { %v2195_v51 = vadd.f32 %v2194_v54, %v2180_v52 }
 0x463   :  { %v2181_v56 = vpop.trf.xlu0 }
 0x464   :  { %v2196_v26 = vadd.f32 %v2195_v51, %v2181_v56 }
 0x466   :  { %v2197_v46 = vrot.slane %v2196_v26, 4 }
 0x468   :  { %v2198_v18 = vadd.f32 %v2197_v46, %v2196_v26 }
 0x46a   :  { %v2199_v14 = vrot.slane %v2198_v18, 2 }
 0x46c   :  { %v2200_v20 = vadd.f32 %v2199_v14, %v2198_v18 }
 0x46e   :  { %v2201_v55 = vrot.slane %v2200_v20, 1 }
 0x470   :  { %v2202_v31 = vadd.f32 %v2201_v55, %v2200_v20 }
 0x472   :  { %v2210_v29 = vadd.f32 %v2209_v9, %v2202_v31 }
 0x474   :  { %2211 = vst [vmem:[%s4295_s11] sm:$0x1] %v2210_v29 }

</bundles_post_ra>
